<compile_context>
chip_gen: v7x
topology: tpu7x:2x2x1
jax: 0.10.0
libtpu: 0.0.40
codegen_flags: <defaults>
</compile_context>

<pallas_src>
import functools

import jax
import jax.numpy as jnp
from jax import lax
from jax.experimental import pallas as pl
from jax.experimental.pallas import tpu as pltpu

KSIZE = 3                      # BasicBlock default kernel_size
PAD = (KSIZE - 1) // 2         # = 1


def basic_block_kernel(xa_ref, xb0_ref, xb1_ref, w_ref, out_ref,
                       tile_ref, acc_ref):
    """Conv3x3 (padding=1, no bias) + ReLU for TH output rows of one image.

    xa_ref : (1, TH, Wp, Cin)        padded rows [i*TH, i*TH + TH)
    xb0_ref: (1, 1,  Wp, Cin)        halo row  i*TH + TH
    xb1_ref: (1, 1,  Wp, Cin)        halo row  i*TH + TH + 1
    w_ref  : (KSIZE, KSIZE*Cin, Cout)  kh-major, (kw, ci) flattened
    out_ref: (1, TH*W, Cout)         conv+relu, Cout minor (natural MXU layout)
    tile_ref: VMEM (TH+2, Wp, Cin)   haloed input tile
    acc_ref : VMEM (TH*W, Cout) f32  accumulator over the 3 kh row-groups
    """
    TH = xa_ref.shape[1]
    Wp = xa_ref.shape[2]
    W = Wp - 2 * PAD

    # Assemble the (TH + 2)-row haloed tile in VMEM scratch.
    tile_ref[0:TH] = xa_ref[0]
    tile_ref[TH] = xb0_ref[0, 0]
    tile_ref[TH + 1] = xb1_ref[0, 0]

    acc_ref[...] = jnp.zeros_like(acc_ref)

    def kh_step(kh, carry):
        rows = tile_ref[pl.ds(kh, TH)]                       # (TH, Wp, Cin)
        # K = 3*Cin row-group patch: concat of the three kw shifts.
        patch = jnp.concatenate(
            [rows[:, kw:kw + W, :] for kw in range(KSIZE)], axis=-1,
        ).reshape(TH * W, KSIZE * rows.shape[-1])
        acc_ref[...] += jnp.dot(patch, w_ref[kh],
                                preferred_element_type=jnp.float32)
        return carry

    lax.fori_loop(0, KSIZE, kh_step, 0, unroll=True)

    out_ref[0] = jnp.maximum(acc_ref[...], 0.0).astype(out_ref.dtype)


def _choose_tile_h(H):
    # Modest tiles keep (input + scratch + output) x 2 buffers well inside
    # v7x's 64 MiB/TC even at RDN sizes (H=W=256, Cin=Cout=64).
    for th in (32, 24, 16, 8):
        if H % th == 0:
            return th
    return H                    # small / odd H: single tile per image


@functools.partial(jax.jit, static_argnames=("tile_h", "compute_dtype"))
def basic_block_forward(x_nchw, w_oihw, *, tile_h=None,
                        compute_dtype=jnp.float32):
    """out = concat([x, relu(conv3x3(x, w))], channel) — PyTorch BasicBlock."""
    N, Cin, H, W = x_nchw.shape
    Cout = w_oihw.shape[0]

    TH = tile_h if tile_h is not None else _choose_tile_h(H)
    assert H % TH == 0 and (TH % 8 == 0 or TH == H), (H, TH)
    nH = H // TH
    Hp, Wp = H + 2 * PAD, W + 2 * PAD

    # Glue: NCHW -> padded NHWC in one copy pass (the transpose is unavoidable
    # at the module boundary; the zero pad rides along in the same pass).
    xpad = jnp.pad(jnp.transpose(x_nchw, (0, 2, 3, 1)),
                   ((0, 0), (PAD, PAD), (PAD, PAD), (0, 0))).astype(compute_dtype)
    # (Cout, Cin, kh, kw) -> (kh, kw*Cin, Cout): one (3*Cin, Cout) slab per kh.
    w_mat = jnp.transpose(w_oihw, (2, 3, 1, 0)).reshape(
        KSIZE, KSIZE * Cin, Cout).astype(compute_dtype)

    conv_flat = pl.pallas_call(
        basic_block_kernel,
        out_shape=jax.ShapeDtypeStruct((N, H * W, Cout), x_nchw.dtype),
        grid_spec=pltpu.PrefetchScalarGridSpec(
            num_scalar_prefetch=0,
            grid=(N, nH),
            in_specs=[
                # TH body rows of the padded image.
                pl.BlockSpec((1, TH, Wp, Cin), lambda n, i: (n, i, 0, 0)),
                # Two single-row bottom-halo fetches (block size 1 on H lets
                # the index map address arbitrary rows of the padded array).
                pl.BlockSpec((1, 1, Wp, Cin),
                             lambda n, i: (n, (i + 1) * TH, 0, 0)),
                pl.BlockSpec((1, 1, Wp, Cin),
                             lambda n, i: (n, (i + 1) * TH + 1, 0, 0)),
                # Conv weights (constant block, tiny).
                pl.BlockSpec((KSIZE, KSIZE * Cin, Cout),
                             lambda n, i: (0, 0, 0)),
            ],
            out_specs=pl.BlockSpec((1, TH * W, Cout), lambda n, i: (n, i, 0)),
            scratch_shapes=[
                pltpu.VMEM((TH + 2 * PAD, Wp, Cin), compute_dtype),
                pltpu.VMEM((TH * W, Cout), jnp.float32),
            ],
        ),
        compiler_params=pltpu.CompilerParams(
            # Both axes are independent -> megacore / v7x can shard either.
            dimension_semantics=("parallel", "parallel"),
            # ~48 MiB leaves headroom on v7x (64 MiB/TC); v5e/v6e have 128 MiB.
            vmem_limit_bytes=48 * 1024 * 1024),
    )(xpad, xpad, xpad, w_mat)

    # x passthrough + channel concat stay in the wrapper (contiguous NCHW).
    conv_nchw = jnp.transpose(conv_flat.reshape(N, H, W, Cout), (0, 3, 1, 2))
    return jnp.concatenate([x_nchw, conv_nchw], axis=1)


def _reference(x_nchw, w_oihw):
    """Pure-JAX reference of BasicBlock.forward (NCHW conv + relu + concat)."""
    conv = lax.conv_general_dilated(
        x_nchw, w_oihw,
        window_strides=(1, 1),
        padding=((PAD, PAD), (PAD, PAD)),
        dimension_numbers=("NCHW", "OIHW", "NCHW"))
    return jnp.concatenate([x_nchw, jax.nn.relu(conv)], axis=1)


if __name__ == "__main__":
    key = jax.random.PRNGKey(0)
    kx, kw_key = jax.random.split(key)

    N, Cin, Cout, H, W = 2, 4, 8, 16, 16
    x = jax.random.normal(kx, (N, Cin, H, W), dtype=jnp.float32)
    w = jax.random.normal(kw_key, (Cout, Cin, KSIZE, KSIZE),
                          dtype=jnp.float32) * 0.1

    ref = _reference(x, w)

    # f32 path, tile_h=8 -> grid (2, 2): exercises H-tiling + halo handling.
    out = jax.block_until_ready(basic_block_forward(x, w, tile_h=8))
    assert out.shape == (N, Cin + Cout, H, W), out.shape
    assert jnp.allclose(out, ref, atol=1e-4, rtol=1e-4), float(
        jnp.max(jnp.abs(out - ref)))

    # bf16 compute path (f32 MXU accumulation) — looser tolerance.
    out_bf16 = jax.block_until_ready(
        basic_block_forward(x, w, tile_h=8, compute_dtype=jnp.bfloat16))
    assert jnp.allclose(out_bf16, ref, atol=6e-2, rtol=6e-2), float(
        jnp.max(jnp.abs(out_bf16 - ref)))

    print("KERNEL_OK")
</pallas_src>

<mosaic_0001>
module attributes {stable_mosaic.version = 11 : i64} {
  func.func @basic_block_kernel(%arg0: i32, %arg1: i32, %arg2: memref<1x8x18x4xf32, #tpu.memory_space<vmem>>, %arg3: memref<1x1x18x4xf32, #tpu.memory_space<vmem>>, %arg4: memref<1x1x18x4xf32, #tpu.memory_space<vmem>>, %arg5: memref<3x12x8xf32, #tpu.memory_space<vmem>>, %arg6: memref<1x128x8xf32, #tpu.memory_space<vmem>>, %arg7: memref<10x18x4xf32, #tpu.memory_space<vmem>>, %arg8: memref<128x8xf32, #tpu.memory_space<vmem>>) attributes {dimension_semantics = [#tpu.dimension_semantics<parallel>, #tpu.dimension_semantics<parallel>], iteration_bounds = array<i64: 2, 2>, scalar_prefetch = 0 : i64, scratch_operands = 2 : i64, tpu.core_type = #tpu.core_type<tc>, window_params = [{transform_indices = @transform_0, window_bounds = array<i64: 1, 8, 18, 4>}, {transform_indices = @transform_1, window_bounds = array<i64: 1, 1, 18, 4>}, {transform_indices = @transform_2, window_bounds = array<i64: 1, 1, 18, 4>}, {pipeline_mode = #tpu.pipeline_mode<synchronous>, transform_indices = @transform_3, window_bounds = array<i64: 3, 12, 8>}, {transform_indices = @transform_4, window_bounds = array<i64: 1, 128, 8>}]} {
    %c0 = arith.constant 0 : index
    %c0_0 = arith.constant 0 : index
    %c0_1 = arith.constant 0 : index
    %c0_2 = arith.constant 0 : index
    %0 = vector.load %arg2[%c0, %c0_0, %c0_1, %c0_2] : memref<1x8x18x4xf32, #tpu.memory_space<vmem>>, vector<1x8x18x4xf32>
    %1 = vector.shape_cast %0 : vector<1x8x18x4xf32> to vector<8x18x4xf32>
    %c0_3 = arith.constant 0 : index
    %c0_4 = arith.constant 0 : index
    %c0_5 = arith.constant 0 : index
    %2 = vector.load %arg7[%c0_3, %c0_4, %c0_5] : memref<10x18x4xf32, #tpu.memory_space<vmem>>, vector<8x18x4xf32>
    tpu.vector_store %arg7[%c0_3, %c0_4, %c0_5], %1 {strides = array<i32>} : memref<10x18x4xf32, #tpu.memory_space<vmem>>, vector<8x18x4xf32>,
    %c0_6 = arith.constant 0 : index
    %c0_7 = arith.constant 0 : index
    %c0_8 = arith.constant 0 : index
    %c0_9 = arith.constant 0 : index
    %3 = vector.load %arg3[%c0_6, %c0_7, %c0_8, %c0_9] : memref<1x1x18x4xf32, #tpu.memory_space<vmem>>, vector<1x1x18x4xf32>
    %4 = vector.shape_cast %3 : vector<1x1x18x4xf32> to vector<18x4xf32>
    %c8 = arith.constant 8 : index
    %c0_10 = arith.constant 0 : index
    %c0_11 = arith.constant 0 : index
    %5 = vector.load %arg7[%c8, %c0_10, %c0_11] : memref<10x18x4xf32, #tpu.memory_space<vmem>>, vector<1x18x4xf32>
    %6 = vector.shape_cast %5 : vector<1x18x4xf32> to vector<18x4xf32>
    %7 = vector.shape_cast %4 : vector<18x4xf32> to vector<1x18x4xf32>
    tpu.vector_store %arg7[%c8, %c0_10, %c0_11], %7 {strides = array<i32>} : memref<10x18x4xf32, #tpu.memory_space<vmem>>, vector<1x18x4xf32>,
    %c0_12 = arith.constant 0 : index
    %c0_13 = arith.constant 0 : index
    %c0_14 = arith.constant 0 : index
    %c0_15 = arith.constant 0 : index
    %8 = vector.load %arg4[%c0_12, %c0_13, %c0_14, %c0_15] : memref<1x1x18x4xf32, #tpu.memory_space<vmem>>, vector<1x1x18x4xf32>
    %9 = vector.shape_cast %8 : vector<1x1x18x4xf32> to vector<18x4xf32>
    %c9 = arith.constant 9 : index
    %c0_16 = arith.constant 0 : index
    %c0_17 = arith.constant 0 : index
    %10 = vector.load %arg7[%c9, %c0_16, %c0_17] : memref<10x18x4xf32, #tpu.memory_space<vmem>>, vector<1x18x4xf32>
    %11 = vector.shape_cast %10 : vector<1x18x4xf32> to vector<18x4xf32>
    %12 = vector.shape_cast %9 : vector<18x4xf32> to vector<1x18x4xf32>
    tpu.vector_store %arg7[%c9, %c0_16, %c0_17], %12 {strides = array<i32>} : memref<10x18x4xf32, #tpu.memory_space<vmem>>, vector<1x18x4xf32>,
    %cst = arith.constant 0.000000e+00 : f32
    %13 = vector.broadcast %cst : f32 to vector<128x8xf32>
    %c0_18 = arith.constant 0 : index
    %c0_19 = arith.constant 0 : index
    %14 = vector.load %arg8[%c0_18, %c0_19] : memref<128x8xf32, #tpu.memory_space<vmem>>, vector<128x8xf32>
    tpu.vector_store %arg8[%c0_18, %c0_19], %13 {strides = array<i32>} : memref<128x8xf32, #tpu.memory_space<vmem>>, vector<128x8xf32>,
    %c0_i32 = arith.constant 0 : i32
    %15 = arith.index_cast %c0_i32 : i32 to index
    %c0_20 = arith.constant 0 : index
    %c0_21 = arith.constant 0 : index
    %16 = vector.load %arg7[%15, %c0_20, %c0_21] : memref<10x18x4xf32, #tpu.memory_space<vmem>>, vector<8x18x4xf32>
    %17 = vector.extract_strided_slice %16 {offsets = [0, 0, 0], sizes = [8, 16, 4], strides = [1, 1, 1]} : vector<8x18x4xf32> to vector<8x16x4xf32>
    %18 = vector.extract_strided_slice %16 {offsets = [0, 1, 0], sizes = [8, 16, 4], strides = [1, 1, 1]} : vector<8x18x4xf32> to vector<8x16x4xf32>
    %19 = vector.extract_strided_slice %16 {offsets = [0, 2, 0], sizes = [8, 16, 4], strides = [1, 1, 1]} : vector<8x18x4xf32> to vector<8x16x4xf32>
    %20 = tpu.concatenate %17, %18, %19 in 2 : vector<8x16x4xf32>, vector<8x16x4xf32>, vector<8x16x4xf32> -> vector<8x16x12xf32>
    %21 = vector.shape_cast %20 : vector<8x16x12xf32> to vector<128x12xf32>
    %c0_22 = arith.constant 0 : index
    %c0_23 = arith.constant 0 : index
    %22 = vector.load %arg8[%c0_22, %c0_23] : memref<128x8xf32, #tpu.memory_space<vmem>>, vector<128x8xf32>
    %23 = arith.index_cast %c0_i32 : i32 to index
    %c0_24 = arith.constant 0 : index
    %c0_25 = arith.constant 0 : index
    %24 = vector.load %arg5[%23, %c0_24, %c0_25] : memref<3x12x8xf32, #tpu.memory_space<vmem>>, vector<1x12x8xf32>
    %25 = vector.shape_cast %24 : vector<1x12x8xf32> to vector<12x8xf32>
    %cst_26 = arith.constant dense<0.000000e+00> : vector<128x8xf32>
    %26 = tpu.matmul %21, %25, %cst_26 {dimension_numbers = #tpu.dot_dimension_numbers<[1], [0], [0], [1], [0, 0, 1, 1], [], []>} : vector<128x12xf32>, vector<12x8xf32>, vector<128x8xf32> -> vector<128x8xf32>
    %27 = arith.addf %22, %26 : vector<128x8xf32>
    %c0_27 = arith.constant 0 : index
    %c0_28 = arith.constant 0 : index
    %28 = vector.load %arg8[%c0_27, %c0_28] : memref<128x8xf32, #tpu.memory_space<vmem>>, vector<128x8xf32>
    tpu.vector_store %arg8[%c0_27, %c0_28], %27 {strides = array<i32>} : memref<128x8xf32, #tpu.memory_space<vmem>>, vector<128x8xf32>,
    %c1_i32 = arith.constant 1 : i32
    %29 = arith.index_cast %c1_i32 : i32 to index
    %c0_29 = arith.constant 0 : index
    %c0_30 = arith.constant 0 : index
    %30 = vector.load %arg7[%29, %c0_29, %c0_30] : memref<10x18x4xf32, #tpu.memory_space<vmem>>, vector<8x18x4xf32>
    %31 = vector.extract_strided_slice %30 {offsets = [0, 0, 0], sizes = [8, 16, 4], strides = [1, 1, 1]} : vector<8x18x4xf32> to vector<8x16x4xf32>
    %32 = vector.extract_strided_slice %30 {offsets = [0, 1, 0], sizes = [8, 16, 4], strides = [1, 1, 1]} : vector<8x18x4xf32> to vector<8x16x4xf32>
    %33 = vector.extract_strided_slice %30 {offsets = [0, 2, 0], sizes = [8, 16, 4], strides = [1, 1, 1]} : vector<8x18x4xf32> to vector<8x16x4xf32>
    %34 = tpu.concatenate %31, %32, %33 in 2 : vector<8x16x4xf32>, vector<8x16x4xf32>, vector<8x16x4xf32> -> vector<8x16x12xf32>
    %35 = vector.shape_cast %34 : vector<8x16x12xf32> to vector<128x12xf32>
    %c0_31 = arith.constant 0 : index
    %c0_32 = arith.constant 0 : index
    %36 = vector.load %arg8[%c0_31, %c0_32] : memref<128x8xf32, #tpu.memory_space<vmem>>, vector<128x8xf32>
    %37 = arith.index_cast %c1_i32 : i32 to index
    %c0_33 = arith.constant 0 : index
    %c0_34 = arith.constant 0 : index
    %38 = vector.load %arg5[%37, %c0_33, %c0_34] : memref<3x12x8xf32, #tpu.memory_space<vmem>>, vector<1x12x8xf32>
    %39 = vector.shape_cast %38 : vector<1x12x8xf32> to vector<12x8xf32>
    %cst_35 = arith.constant dense<0.000000e+00> : vector<128x8xf32>
    %40 = tpu.matmul %35, %39, %cst_35 {dimension_numbers = #tpu.dot_dimension_numbers<[1], [0], [0], [1], [0, 0, 1, 1], [], []>} : vector<128x12xf32>, vector<12x8xf32>, vector<128x8xf32> -> vector<128x8xf32>
    %41 = arith.addf %36, %40 : vector<128x8xf32>
    %c0_36 = arith.constant 0 : index
    %c0_37 = arith.constant 0 : index
    %42 = vector.load %arg8[%c0_36, %c0_37] : memref<128x8xf32, #tpu.memory_space<vmem>>, vector<128x8xf32>
    tpu.vector_store %arg8[%c0_36, %c0_37], %41 {strides = array<i32>} : memref<128x8xf32, #tpu.memory_space<vmem>>, vector<128x8xf32>,
    %c2_i32 = arith.constant 2 : i32
    %43 = arith.index_cast %c2_i32 : i32 to index
    %c0_38 = arith.constant 0 : index
    %c0_39 = arith.constant 0 : index
    %44 = vector.load %arg7[%43, %c0_38, %c0_39] : memref<10x18x4xf32, #tpu.memory_space<vmem>>, vector<8x18x4xf32>
    %45 = vector.extract_strided_slice %44 {offsets = [0, 0, 0], sizes = [8, 16, 4], strides = [1, 1, 1]} : vector<8x18x4xf32> to vector<8x16x4xf32>
    %46 = vector.extract_strided_slice %44 {offsets = [0, 1, 0], sizes = [8, 16, 4], strides = [1, 1, 1]} : vector<8x18x4xf32> to vector<8x16x4xf32>
    %47 = vector.extract_strided_slice %44 {offsets = [0, 2, 0], sizes = [8, 16, 4], strides = [1, 1, 1]} : vector<8x18x4xf32> to vector<8x16x4xf32>
    %48 = tpu.concatenate %45, %46, %47 in 2 : vector<8x16x4xf32>, vector<8x16x4xf32>, vector<8x16x4xf32> -> vector<8x16x12xf32>
    %49 = vector.shape_cast %48 : vector<8x16x12xf32> to vector<128x12xf32>
    %c0_40 = arith.constant 0 : index
    %c0_41 = arith.constant 0 : index
    %50 = vector.load %arg8[%c0_40, %c0_41] : memref<128x8xf32, #tpu.memory_space<vmem>>, vector<128x8xf32>
    %51 = arith.index_cast %c2_i32 : i32 to index
    %c0_42 = arith.constant 0 : index
    %c0_43 = arith.constant 0 : index
    %52 = vector.load %arg5[%51, %c0_42, %c0_43] : memref<3x12x8xf32, #tpu.memory_space<vmem>>, vector<1x12x8xf32>
    %53 = vector.shape_cast %52 : vector<1x12x8xf32> to vector<12x8xf32>
    %cst_44 = arith.constant dense<0.000000e+00> : vector<128x8xf32>
    %54 = tpu.matmul %49, %53, %cst_44 {dimension_numbers = #tpu.dot_dimension_numbers<[1], [0], [0], [1], [0, 0, 1, 1], [], []>} : vector<128x12xf32>, vector<12x8xf32>, vector<128x8xf32> -> vector<128x8xf32>
    %55 = arith.addf %50, %54 : vector<128x8xf32>
    %c0_45 = arith.constant 0 : index
    %c0_46 = arith.constant 0 : index
    %56 = vector.load %arg8[%c0_45, %c0_46] : memref<128x8xf32, #tpu.memory_space<vmem>>, vector<128x8xf32>
    tpu.vector_store %arg8[%c0_45, %c0_46], %55 {strides = array<i32>} : memref<128x8xf32, #tpu.memory_space<vmem>>, vector<128x8xf32>,
    %c3_i32 = arith.constant 3 : i32
    %c0_47 = arith.constant 0 : index
    %c0_48 = arith.constant 0 : index
    %57 = vector.load %arg8[%c0_47, %c0_48] : memref<128x8xf32, #tpu.memory_space<vmem>>, vector<128x8xf32>
    %cst_49 = arith.constant 0.000000e+00 : f32
    %58 = vector.broadcast %cst_49 : f32 to vector<128x8xf32>
    %59 = arith.maximumf %57, %58 : vector<128x8xf32>
    %c0_50 = arith.constant 0 : index
    %c0_51 = arith.constant 0 : index
    %c0_52 = arith.constant 0 : index
    %60 = vector.load %arg6[%c0_50, %c0_51, %c0_52] : memref<1x128x8xf32, #tpu.memory_space<vmem>>, vector<1x128x8xf32>
    %61 = vector.shape_cast %60 : vector<1x128x8xf32> to vector<128x8xf32>
    %62 = vector.shape_cast %59 : vector<128x8xf32> to vector<1x128x8xf32>
    tpu.vector_store %arg6[%c0_50, %c0_51, %c0_52], %62 {strides = array<i32>} : memref<1x128x8xf32, #tpu.memory_space<vmem>>, vector<1x128x8xf32>,
    return
  }
  func.func @transform_0(%arg0: i32, %arg1: i32) -> (i32, i32, i32, i32) {
    %c0_i32 = arith.constant 0 : i32
    %c0_i32_0 = arith.constant 0 : i32
    %c0_i32_1 = arith.constant 0 : i32
    return %arg0, %arg1, %c0_i32, %c0_i32_0 : i32, i32, i32, i32
  }
  func.func @transform_1(%arg0: i32, %arg1: i32) -> (i32, i32, i32, i32) {
    %c1_i32 = arith.constant 1 : i32
    %0 = arith.addi %arg1, %c1_i32 : i32
    %c8_i32 = arith.constant 8 : i32
    %1 = arith.muli %0, %c8_i32 : i32
    %c0_i32 = arith.constant 0 : i32
    %c0_i32_0 = arith.constant 0 : i32
    %c0_i32_1 = arith.constant 0 : i32
    return %arg0, %1, %c0_i32, %c0_i32_0 : i32, i32, i32, i32
  }
  func.func @transform_2(%arg0: i32, %arg1: i32) -> (i32, i32, i32, i32) {
    %c1_i32 = arith.constant 1 : i32
    %0 = arith.addi %arg1, %c1_i32 : i32
    %c8_i32 = arith.constant 8 : i32
    %1 = arith.muli %0, %c8_i32 : i32
    %c1_i32_0 = arith.constant 1 : i32
    %2 = arith.addi %1, %c1_i32_0 : i32
    %c0_i32 = arith.constant 0 : i32
    %c0_i32_1 = arith.constant 0 : i32
    %c0_i32_2 = arith.constant 0 : i32
    return %arg0, %2, %c0_i32, %c0_i32_1 : i32, i32, i32, i32
  }
  func.func @transform_3(%arg0: i32, %arg1: i32) -> (i32, i32, i32) {
    %c0_i32 = arith.constant 0 : i32
    %c0_i32_0 = arith.constant 0 : i32
    %c0_i32_1 = arith.constant 0 : i32
    %c0_i32_2 = arith.constant 0 : i32
    return %c0_i32, %c0_i32_0, %c0_i32_1 : i32, i32, i32
  }
  func.func @transform_4(%arg0: i32, %arg1: i32) -> (i32, i32, i32) {
    %c0_i32 = arith.constant 0 : i32
    %c0_i32_0 = arith.constant 0 : i32
    return %arg0, %arg1, %c0_i32 : i32, i32, i32
  }
}

</mosaic_0001>

<bundles_post_ra>
// kernel: basic_block_forward.1
= control target key start
LH: loop header
LB: loop body
LE: loop exit
PB: predicated region body
PF: predicated region fallthrough
CT: control target
= control target key end

     0   :  { %s2514_s15 = smov 0   ;;  %s2516_s16 = smov 0   ;;  %s3375_s0 = inlined_call_operand.vmem [shape: f32[2,18,18,4], index: 0, kind: input, shape index: {}, may-alias: {0,1,2}]   ;;  %s3376_s1 = inlined_call_operand.vmem [shape: f32[2,18,18,4], index: 1, kind: input, shape index: {}, may-alias: {0,1,2}]   ;;  %s3377_s2 = inlined_call_operand.vmem [shape: f32[2,18,18,4], index: 2, kind: input, shape index: {}, may-alias: {0,1,2}]   ;;  %s3378_s3 = inlined_call_operand.vmem [shape: f32[3,12,8], index: 3, kind: input, shape index: {}]   ;;  %s3379_s4 = inlined_call_operand.vmem [shape: f32[2,256,8], index: 4, kind: output, shape index: {}]  }
   0x1   :  { %s2518_s17 = smov 0   ;;  %s2520_s18 = smov 0  }
   0x2   :  { %s2522_s19 = smov 0  }
   0x3 LB: > { %s23_s20 = sadd.s32 1, %s2475_s17  ;;  %s26_s21 = sadd.s32 1, %s2479_s18  ;;  %s2483_s19 = sphi %s2522_s19, %s14_s19   ;;  %s2479_s18 = sphi %s2520_s18, %s3385_s18   ;;  %s2475_s17 = sphi %s2518_s17, %s3384_s17   ;;  %s2471_s16 = sphi %s2516_s16, %s3383_s16   ;;  %s2467_s15 = sphi %s2514_s15, %s3382_s15  }
   0x4   : > { %p24_p0 = scmp.ge.s32.totalorder %s23_s20, 2  ;;  %p2154_p1 = scmp.ge.s32.totalorder %s2483_s19, 1 }
   0x5   : > { %p246_p2 = scmp.lt.s32.totalorder %s2483_s19, 5 }
   0x6   : > { %s3387_s20 = smov (%p24_p0, %s23_s20), 0  ;;  %s3389_s21 = smov (!%p24_p0, %s26_s21), %s2479_s18 }
   0x7   : > { %p247_p3 = pnand %p2154_p1, %p246_p2  ;;  %p28_p4 = scmp.ge.s32.totalorder %s3389_s21, 2 }
   0x8   : > { %s2547_s22 = sshll.u32 (!%p247_p3), %s2467_s15, 3  ;;  %p315_p5 = scmp.lt.s32.totalorder (!%p247_p3), %s2471_s16, 1  ;;  %vm392_vm0 = vcmask (!%p247_p3), 31744   ;;  %vm395_vm1 = vcmask (!%p247_p3), 25600   ;;  %v723_v6 = vld [vmem:[%s3378_s3] sm:$0xff] (!%p247_p3)  ;;  %vm774_vm2 = vcmask (!%p247_p3), 1043456  }
   0x9   : > { %s3391_s21 = smov (%p28_p4, %s3389_s21), 0  ;;  %250 = sbr.rel (%p247_p3) target bundleno = 571 (0x23b), region = 36 }
   0xa   : > { %p317_p6 = scmp.lt.s32.totalorder (!%p247_p3), %s2547_s22, 17  ;;  %v724_v7 = vld [vmem:[%s3378_s3 + $0x8] sm:$0xf] (!%p247_p3)  ;;  %vm586_vm3 = vcmask (!%p247_p3), 1045504   ;;  %vm497_vm4 = vcmask (!%p247_p3), 1046528   ;;  %vm2485_vm5 = vmmov (!%p247_p3), 1  }
   0xb   : > { %v2371_v23 = vpack.c.bf16 (!%p247_p3), %v724_v7, %v723_v6  ;;  %vm2631_vm6 = vmpackc.low (!%p247_p3), %vm774_vm2, %vm2485_vm5  ;;  %s2486_s9 = smov (!%p247_p3), 8   ;;  %s2487_s10 = smov (!%p247_p3), 4   ;;  %vm432_vm7 = vcmask (!%p247_p3), 64512   ;;  %vm725_vm8 = vcmask (!%p247_p3), 97280  }
   0xc   : > { %s2682_s11 = sadd.s32 (!%p247_p3), 8, %s2547_s22 }
   0xd   : > { %2389 = vmatprep.subr.msk.bf16.mxu1 (!%p247_p3), %vm2631_vm6, %v2371_v23  ;;  %2373 = vmatprep.subr.msk.bf16.mxu0 (!%p247_p3), %vm2631_vm6, %v2371_v23  ;;  %p334_p7 = scmp.lt.s32.totalorder (!%p247_p3), %s2682_s11, 17 }
   0xe   : > { %2390 = vmatpush3.bf16.msk.msra.mxu1 (!%p247_p3), %vm2631_vm6, %v2371_v23  ;;  %2376 = vmatpush3.bf16.msk.msra.mxu0 (!%p247_p3), %vm2631_vm6, %v2371_v23 }
  0x10   : > { %s3393_s16 = smov (!%p315_p5, %s2471_s16), 1 }
  0x11   : > { %s318_s23 = scalar_select %p317_p6, %s2547_s22, 17 }
  0x12   : > { %s2554_s24 = smul.u32 54, %s3393_s16 }
  0x13   : > { %s2391_s25 = smul.u32 3, %s318_s23 }
  0x14   : > { %s335_s12 = scalar_select %p334_p7, %s2682_s11, 17 }
  0x15   : > { %s321_s26 = sadd.s32 %s2554_s24, %s2391_s25 }
  0x16   : > { %s2156_s27 = sshll.u32 %s321_s26, 3  ;;  %s2393_s13 = smul.u32 3, %s335_s12 }
  0x17   : > { %s2560_s30 = scalar_lea.vmem %s3375_s0, %s2156_s27  ;;  %s345_s27 = sadd.s32 1, %s2682_s11 }
  0x18   : > { %v380_v0 = vld [vmem:[%s2560_s30 + $0x60] sm:$0xff]  ;;  %v381_v1 = vld [vmem:[%s2560_s30 + $0x68] sm:$0xff]  ;;  %v382_v2 = vld [vmem:[%s2560_s30 + $0x70] sm:$0x3]  ;;  %s338_s14 = sadd.s32 %s2393_s13, %s2554_s24  ;;  %p348_p8 = scmp.lt.s32.totalorder %s345_s27, 17 }
  0x19   : > { %406 = vst.msk [vmem:[#allocation2 + $0x60] sm:$0xff] %vm392_vm0, %v380_v0  ;;  %407 = vst.msk [vmem:[#allocation2 + $0x68] sm:$0xff] %vm392_vm0, %v381_v1  ;;  %v384_v3 = vld [vmem:[%s2560_s30 + $0x80] sm:$0xff]  ;;  %v385_v4 = vld [vmem:[%s2560_s30 + $0x88] sm:$0x3]  ;;  %s2158_s22 = sshll.u32 %s338_s14, 3 }
  0x1a   : > { %408 = vst.msk [vmem:[#allocation2 + $0x70] sm:$0x3] %vm395_vm1, %v382_v2  ;;  %v383_v5 = vld [vmem:[%s2560_s30 + $0x78] sm:$0xff]  ;;  %411 = vst.msk [vmem:[#allocation2 + $0x88] sm:$0x3] %vm395_vm1, %v385_v4  ;;  %v386_v10 = vld [vmem:[%s2560_s30 + $0x90] sm:$0xff]  ;;  %s340_s26 = scalar_lea.vmem %s3376_s1, %s2158_s22 }
  0x1b   : > { %410 = vst.msk [vmem:[#allocation2 + $0x80] sm:$0xff] %vm392_vm0, %v384_v3  ;;  %409 = vst.msk [vmem:[#allocation2 + $0x78] sm:$0xff] %vm392_vm0, %v383_v5  ;;  %v387_v8 = vld [vmem:[%s2560_s30 + $0x98] sm:$0xff]  ;;  %v388_v9 = vld [vmem:[%s2560_s30 + $0xa0] sm:$0x3]  ;;  %s3395_s27 = smov (!%p348_p8, %s345_s27), 17 }
  0x1c   : > { %413 = vst.msk [vmem:[#allocation2 + $0x98] sm:$0xff] %vm392_vm0, %v387_v8  ;;  %412 = vst.msk [vmem:[#allocation2 + $0x90] sm:$0xff] %vm392_vm0, %v386_v10  ;;  %v368_v11 = vld [vmem:[%s2560_s30] sm:$0xff]  ;;  %v369_v12 = vld [vmem:[%s2560_s30 + $0x8] sm:$0xff]  ;;  %s2394_s6 = smul.u32 3, %s3395_s27 }
  0x1d   : > { %414 = vst.msk [vmem:[#allocation2 + $0xa0] sm:$0x3] %vm395_vm1, %v388_v9  ;;  %v370_v13 = vld [vmem:[%s2560_s30 + $0x10] sm:$0x3]  ;;  %v389_v14 = vld [vmem:[%s2560_s30 + $0xa8] sm:$0xff]  ;;  %v371_v17 = vld [vmem:[%s2560_s30 + $0x18] sm:$0xff] }
  0x1e   : > { %393 = vst.msk [vmem:[#allocation2] sm:$0xff] %vm392_vm0, %v368_v11  ;;  %394 = vst.msk [vmem:[#allocation2 + $0x8] sm:$0xff] %vm392_vm0, %v369_v12  ;;  %v390_v15 = vld [vmem:[%s2560_s30 + $0xb0] sm:$0xff]  ;;  %v391_v16 = vld [vmem:[%s2560_s30 + $0xb8] sm:$0x3]  ;;  %s352_s7 = sadd.s32 %s2394_s6, %s2554_s24 }
  0x1f   : > { %396 = vst.msk [vmem:[#allocation2 + $0x10] sm:$0x3] %vm395_vm1, %v370_v13  ;;  %417 = vst.msk [vmem:[#allocation2 + $0xb8] sm:$0x3] %vm395_vm1, %v391_v16  ;;  %v372_v18 = vld [vmem:[%s2560_s30 + $0x20] sm:$0xff]  ;;  %v374_v20 = vld [vmem:[%s2560_s30 + $0x30] sm:$0xff] }
  0x20   : > { %415 = vst.msk [vmem:[#allocation2 + $0xa8] sm:$0xff] %vm392_vm0, %v389_v14  ;;  %416 = vst.msk [vmem:[#allocation2 + $0xb0] sm:$0xff] %vm392_vm0, %v390_v15  ;;  %v373_v19 = vld [vmem:[%s2560_s30 + $0x28] sm:$0x3]  ;;  %v375_v21 = vld [vmem:[%s2560_s30 + $0x38] sm:$0xff]  ;;  %s2160_s8 = sshll.u32 %s352_s7, 3 }
  0x21   : > { %397 = vst.msk [vmem:[#allocation2 + $0x18] sm:$0xff] %vm392_vm0, %v371_v17  ;;  %398 = vst.msk [vmem:[#allocation2 + $0x20] sm:$0xff] %vm392_vm0, %v372_v18  ;;  %v376_v22 = vld [vmem:[%s2560_s30 + $0x40] sm:$0x3]  ;;  %v377_v24 = vld [vmem:[%s2560_s30 + $0x48] sm:$0xff]  ;;  %s354_s13 = scalar_lea.vmem %s3377_s2, %s2160_s8 }
  0x22   : > { %399 = vst.msk [vmem:[#allocation2 + $0x28] sm:$0x3] %vm395_vm1, %v373_v19  ;;  %402 = vst.msk [vmem:[#allocation2 + $0x40] sm:$0x3] %vm395_vm1, %v376_v22  ;;  %v378_v25 = vld [vmem:[%s2560_s30 + $0x50] sm:$0xff]  ;;  %v2613_v27 = vld [vmem:[#allocation2 + $0x60] sm:$0xff] }
  0x23   : > { %400 = vst.msk [vmem:[#allocation2 + $0x30] sm:$0xff] %vm392_vm0, %v374_v20  ;;  %401 = vst.msk [vmem:[#allocation2 + $0x38] sm:$0xff] %vm392_vm0, %v375_v21  ;;  %v379_v26 = vld [vmem:[%s2560_s30 + $0x58] sm:$0x3]  ;;  %v2615_v28 = vld [vmem:[#allocation2 + $0x68] sm:$0xff]  ;;  %v607_v30 = vrot.slane %v2613_v27, 2 }
  0x24   : > { %v463_v29 = vld [vmem:[#allocation2 + $0x70] sm:$0x3]  ;;  %403 = vst.msk [vmem:[#allocation2 + $0x48] sm:$0xff] %vm392_vm0, %v377_v24  ;;  %404 = vst.msk [vmem:[#allocation2 + $0x50] sm:$0xff] %vm392_vm0, %v378_v25  ;;  %v2622_v31 = vrot.slane %v2615_v28, 2  ;;  %v518_v32 = vrot.slane %v2613_v27, 1 }
  0x25   : > { %405 = vst.msk [vmem:[#allocation2 + $0x58] sm:$0x3] %vm395_vm1, %v379_v26  ;;  %v2626_v33 = vrot.slane %v2615_v28, 1  ;;  %v2628_v34 = vld [vmem:[#allocation2 + $0x80] sm:$0xff]  ;;  %v610_v36 = vrot.slane %v463_v29, 2  ;;  %v521_v37 = vrot.slane %v463_v29, 1 }
  0x26   : > { %v466_v38 = vld [vmem:[#allocation2 + $0x88] sm:$0x3]  ;;  %v2635_v39 = vld [vmem:[#allocation2 + $0x78] sm:$0xff]  ;;  %v2643_v40 = vsel %vm586_vm3, %v607_v30, %v2622_v31  ;;  %v2658_v42 = vrot.slane %v2628_v34, 1  ;;  %v2668_v47 = vrot.slane %v2628_v34, 2  ;;  %v2679_v54 = vld [vmem:[#allocation2 + $0x90] sm:$0xff] }
  0x27   : > { %v2647_v41 = vsel %vm497_vm4, %v518_v32, %v2626_v33  ;;  %643 = vrot.lane.b32.xlu1 %v2643_v40, %s2486_s9  ;;  %v611_v43 = vsel %vm586_vm3, %v2622_v31, %v610_v36  ;;  %v522_v44 = vsel %vm497_vm4, %v2626_v33, %v521_v37  ;;  %v526_v45 = vrot.slane %v466_v38, 1  ;;  %v2677_v52 = vld [vmem:[#allocation2 + $0x98] sm:$0xff]  ;;  %v469_v53 = vld [vmem:[#allocation2 + $0xa0] sm:$0x3]  ;;  %v2699_v61 = vld [vmem:[#allocation2 + $0x8] sm:$0xff] }
  0x28   : > { %554 = vrot.lane.b32.xlu0 %v2647_v41, %s2487_s10  ;;  %v523_v46 = vrot.slane %v2635_v39, 1  ;;  %v615_v50 = vrot.slane %v466_v38, 2  ;;  %v612_v51 = vrot.slane %v2635_v39, 2  ;;  %v2688_v55 = vrot.slane %v2677_v52, 1  ;;  %v2697_v60 = vld [vmem:[#allocation2] sm:$0xff]  ;;  %v2727_v7 = vld [vmem:[#allocation2 + $0xa8] sm:$0xff] }
  0x29   : > { %v527_v48 = vsel %vm497_vm4, %v2658_v42, %v526_v45  ;;  %v531_v58 = vrot.slane %v469_v53, 1  ;;  %v528_v59 = vrot.slane %v2679_v54, 1  ;;  %v617_v62 = vrot.slane %v2679_v54, 2  ;;  %v2718_v4 = vld [vmem:[#allocation2 + $0x10] sm:$0x3]  ;;  %v418_v18 = vld [vmem:[%s340_s26] sm:$0xff] }
  0x2a   : > { %v2674_v49 = vsel %vm497_vm4, %v523_v46, %v2658_v42  ;;  %v616_v56 = vsel %vm586_vm3, %v2668_v47, %v615_v50  ;;  %v2694_v57 = vsel %vm586_vm3, %v612_v51, %v2668_v47  ;;  %v2707_v63 = vrot.slane %v2677_v52, 2  ;;  %v2729_v8 = vld [vmem:[#allocation2 + $0xb0] sm:$0xff]  ;;  %v2736_v14 = vld [vmem:[#allocation2 + $0xb8] sm:$0x3]  ;;  %v970_v17 = vld [vmem:[#allocation2 + $0x88] sm:$0x3] }
  0x2b   : > { %645 = vrot.lane.b32.xlu1 %v611_v43, %s2486_s9  ;;  %v532_v0 = vsel %vm497_vm4, %v2688_v55, %v531_v58  ;;  %v2714_v1 = vsel %vm497_vm4, %v528_v59, %v2688_v55  ;;  %v498_v2 = vrot.slane %v2697_v60, 1  ;;  %v499_v3 = vrot.slane %v2699_v61, 1  ;;  %v967_v13 = vld [vmem:[#allocation2 + $0x70] sm:$0x3]  ;;  %v419_v19 = vld [vmem:[%s340_s26 + $0x8] sm:$0xff]  ;;  %422 = vst.msk [vmem:[#allocation2 + $0xc0] sm:$0xff] %vm392_vm0, %v418_v18 }
  0x2c   : > { %556 = vrot.lane.b32.xlu0 %v522_v44, %s2487_s10  ;;  %v2725_v5 = vsel %vm586_vm3, %v617_v62, %v2707_v63  ;;  %v620_v6 = vrot.slane %v469_v53, 2  ;;  %v501_v10 = vrot.slane %v2718_v4, 1  ;;  %v587_v11 = vrot.slane %v2697_v60, 2  ;;  %v1468_v23 = vld [vmem:[#allocation2 + $0x70] sm:$0x3]  ;;  %423 = vst.msk [vmem:[#allocation2 + $0xc8] sm:$0xff] %vm392_vm0, %v419_v19 }
  0x2d   : > { %v500_v9 = vsel %vm497_vm4, %v498_v2, %v499_v3  ;;  %v588_v12 = vrot.slane %v2699_v61, 2  ;;  %v533_v15 = vrot.slane %v2727_v7, 1  ;;  %v2743_v16 = vrot.slane %v2729_v8, 1  ;;  %v973_v30 = vld [vmem:[#allocation2 + $0xa0] sm:$0x3] }
  0x2e   : > { %v621_v20 = vsel %vm586_vm3, %v2707_v63, %v620_v6  ;;  %v1022_v21 = vrot.slane %v967_v13, 1  ;;  %v1110_v22 = vrot.slane %v967_v13, 2  ;;  %v502_v24 = vsel %vm497_vm4, %v499_v3, %v501_v10  ;;  %v420_v32 = vld [vmem:[%s340_s26 + $0x10] sm:$0x3]  ;;  %v1471_v44 = vld [vmem:[#allocation2 + $0x88] sm:$0x3] }
  0x2f   : > { %560 = vrot.lane.b32.xlu1 %v527_v48, %s2487_s10  ;;  %v589_v25 = vsel %vm586_vm3, %v587_v11, %v588_v12  ;;  %v590_v26 = vrot.slane %v2718_v4, 2  ;;  %v536_v29 = vrot.slane %v2736_v14, 1  ;;  %v1027_v38 = vrot.slane %v970_v17, 1  ;;  %424 = vst.msk [vmem:[#allocation2 + $0xd0] sm:$0x3] %vm395_vm1, %v420_v32  ;;  %v2790_v6 = vld [vmem:[#allocation2 + $0x18] sm:$0xff] }
  0x30   : > { %558 = vrot.lane.b32.xlu0 %v2674_v49, %s2487_s10  ;;  %v2758_v36 = vsel %vm497_vm4, %v2626_v33, %v1022_v21  ;;  %v2762_v37 = vsel %vm586_vm3, %v2622_v31, %v1110_v22  ;;  %v1115_v43 = vrot.slane %v970_v17, 2  ;;  %v2767_v45 = vsel %vm497_vm4, %v533_v15, %v2743_v16  ;;  %v976_v51 = vld [vmem:[#allocation2 + $0xb8] sm:$0x3]  ;;  %v1474_v62 = vld [vmem:[#allocation2 + $0xa0] sm:$0x3] }
  0x31   : > { %v2770_v46 = vrot.slane %v2729_v8, 2  ;;  %v1521_v48 = vrot.slane %v1468_v23, 1  ;;  %v1609_v50 = vrot.slane %v1468_v23, 2  ;;  %v2776_v53 = vsel %vm497_vm4, %v2658_v42, %v1027_v38  ;;  %v454_v23 = vld [vmem:[#allocation2 + $0x28] sm:$0x3] }
  0x32   : > { %v1032_v58 = vrot.slane %v973_v30, 1  ;;  %v1120_v59 = vrot.slane %v973_v30, 2  ;;  %v1526_v3 = vrot.slane %v1471_v44, 1  ;;  %v1614_v4 = vrot.slane %v1471_v44, 2 }
  0x33   : > { %649 = vrot.lane.b32.xlu1 %v616_v56, %s2486_s9  ;;  %v2780_v56 = vsel %vm586_vm3, %v2668_v47, %v1115_v43  ;;  %v2788_v2 = vsel %vm586_vm3, %v2622_v31, %v1609_v50  ;;  %v1125_v13 = vrot.slane %v976_v51, 2  ;;  %v1531_v17 = vrot.slane %v1474_v62, 1  ;;  %v2181_v50 = vld [vmem:[%s3378_s3 + $0x10] sm:$0xff] }
  0x34   : > { %647 = vrot.lane.b32.xlu0 %v2694_v57, %s2486_s9  ;;  %v2796_v10 = vsel %vm497_vm4, %v2688_v55, %v1032_v58  ;;  %v2800_v11 = vsel %vm586_vm3, %v2707_v63, %v1120_v59  ;;  %v2804_v31 = vsel %vm497_vm4, %v2658_v42, %v1526_v3  ;;  %v2808_v15 = vsel %vm586_vm3, %v2668_v47, %v1614_v4 }
  0x35   : > { %v591_v18 = vsel %vm586_vm3, %v588_v12, %v590_v26  ;;  %v622_v19 = vrot.slane %v2727_v7, 2  ;;  %v2821_v42 = vsel %vm586_vm3, %v2770_v46, %v1125_v13  ;;  %v537_v47 = vsel %vm497_vm4, %v2743_v16, %v536_v29  ;;  %v2871_v13 = vld [vmem:[#allocation2 + $0x30] sm:$0xff] }
  0x36   : > { %v503_v21 = vrot.slane %v2790_v6, 1  ;;  %v2829_v12 = vsel %vm497_vm4, %v2688_v55, %v1531_v17  ;;  %v625_v30 = vrot.slane %v2736_v14, 2  ;;  %v506_v55 = vrot.slane %v454_v23, 1  ;;  %v1477_v14 = vld [vmem:[#allocation2 + $0xb8] sm:$0x3] }
  0x37   : > { %564 = vrot.lane.b32.xlu1 %v532_v0, %s2487_s10  ;;  %v2784_v0 = vsel %vm497_vm4, %v2626_v33, %v1521_v48  ;;  %v1037_v33 = vrot.slane %v976_v51, 1  ;;  %v2839_v26 = vsel %vm586_vm3, %v622_v19, %v2770_v46  ;;  %v592_v32 = vrot.slane %v2790_v6, 2  ;;  %v958_v48 = vld [vmem:[#allocation2 + $0x28] sm:$0x3]  ;;  %v2182_v51 = vld [vmem:[%s3378_s3 + $0x18] sm:$0xf] }
  0x38   : > { %562 = vrot.lane.b32.xlu0 %v2714_v1, %s2487_s10  ;;  %v595_v44 = vrot.slane %v454_v23, 2  ;;  %v1536_v58 = vrot.slane %v1477_v14, 1  ;;  %v2858_v59 = vpack.c.bf16 %v2182_v51, %v2181_v50  ;;  %v2873_v17 = vld [vmem:[#allocation2 + $0x38] sm:$0xff]  ;;  %v425_v23 = vld [vmem:[%s354_s13] sm:$0xff] }
  0x39   : > { %429 = vst.msk [vmem:[#allocation2 + $0xd8] sm:$0xff] %vm392_vm0, %v425_v23  ;;  %v961_v50 = vld [vmem:[#allocation2 + $0x40] sm:$0x3] }
  0x3a   : > { %2379 = vmatprep.subr.msk.bf16.mxu1 %vm2631_vm6, %v2858_v59  ;;  %v1100_v23 = vrot.slane %v961_v50, 2 }
  0x3b   : > { %538 = vrot.lane.b32.xlu1 %v500_v9, %s2487_s10  ;;  %v2792_v9 = vld [vmem:[#allocation2 + $0x20] sm:$0xff] }
  0x3c   : > { %651 = vrot.lane.b32.xlu0 %v2725_v5, %s2486_s9  ;;  %v504_v22 = vrot.slane %v2792_v9, 1  ;;  %v593_v43 = vrot.slane %v2792_v9, 2 }
  0x3e   : > { %v505_v29 = vsel %vm497_vm4, %v503_v21, %v504_v22  ;;  %v507_v38 = vsel %vm497_vm4, %v504_v22, %v506_v55  ;;  %v594_v3 = vsel %vm586_vm3, %v592_v32, %v593_v43  ;;  %v596_v4 = vsel %vm586_vm3, %v593_v43, %v595_v44 }
  0x3f   : > { %540 = vrot.lane.b32.xlu1 %v502_v24, %s2487_s10  ;;  %v1619_v24 = vrot.slane %v1474_v62, 2  ;;  %v2864_v62 = vsel %vm497_vm4, %v2743_v16, %v1536_v58  ;;  %v2888_v21 = vrot.slane %v2873_v17, 1  ;;  %v1095_v55 = vrot.slane %v958_v48, 2 }
  0x40   : > { %653 = vrot.lane.b32.xlu0 %v621_v20, %s2486_s9  ;;  %v2817_v20 = vsel %vm497_vm4, %v2743_v16, %v1037_v33  ;;  %v1007_v33 = vrot.slane %v958_v48, 1  ;;  %v1012_v58 = vrot.slane %v961_v50, 1 }
  0x42   : > { %v1008_v19 = vsel %vm497_vm4, %v504_v22, %v1007_v33 }
  0x43   : > { %566 = vrot.lane.b32.xlu1 %v2767_v45, %s2487_s10 }
  0x44   : > { %627 = vrot.lane.b32.xlu0 %v589_v25, %s2486_s9  ;;  %v2835_v25 = vsel %vm586_vm3, %v2707_v63, %v1619_v24  ;;  %v626_v63 = vsel %vm586_vm3, %v2770_v46, %v625_v30  ;;  %v426_v24 = vld [vmem:[%s354_s13 + $0x8] sm:$0xff]  ;;  %v457_v30 = vld [vmem:[#allocation2 + $0x40] sm:$0x3] }
  0x45   : > { %430 = vst.msk [vmem:[#allocation2 + $0xe0] sm:$0xff] %vm392_vm0, %v426_v24  ;;  %v511_v32 = vrot.slane %v457_v30, 1 }
  0x47   : > { %568 = vrot.lane.b32.xlu1 %v537_v47, %s2487_s10  ;;  %v508_v47 = vrot.slane %v2871_v13, 1  ;;  %v512_v44 = vsel %vm497_vm4, %v2888_v21, %v511_v32 }
  0x48   : > { %629 = vrot.lane.b32.xlu0 %v591_v18, %s2486_s9  ;;  %v1624_v18 = vrot.slane %v1477_v14, 2  ;;  %v600_v14 = vrot.slane %v457_v30, 2 }
  0x49   : > { %v510_v22 = vsel %vm497_vm4, %v508_v47, %v2888_v21 }
  0x4a   : > { %v2880_v16 = vsel %vm586_vm3, %v2770_v46, %v1624_v18  ;;  %v427_v46 = vld [vmem:[%s354_s13 + $0x10] sm:$0x3] }
  0x4b   : > { %542 = vrot.lane.b32.xlu1 %v505_v29, %s2487_s10  ;;  %431 = vst.msk [vmem:[#allocation2 + $0xe8] sm:$0x3] %vm395_vm1, %v427_v46 }
  0x4c   : > { %655 = vrot.lane.b32.xlu0 %v2839_v26, %s2486_s9 }
  0x4f   : > { %544 = vrot.lane.b32.xlu1 %v507_v38, %s2487_s10  ;;  %v1096_v38 = vsel %vm586_vm3, %v593_v43, %v1095_v55  ;;  %v1013_v43 = vsel %vm497_vm4, %v2888_v21, %v1012_v58 }
  0x50   : > { %657 = vrot.lane.b32.xlu0 %v626_v63, %s2486_s9  ;;  %v597_v63 = vrot.slane %v2871_v13, 2 }
  0x53   : > { %633 = vrot.lane.b32.xlu1 %v596_v4, %s2486_s9  ;;  %v2910_v4 = vld [vmem:[#allocation2 + $0x50] sm:$0xff] }
  0x54   : > { %631 = vrot.lane.b32.xlu0 %v594_v3, %s2486_s9  ;;  %v514_v18 = vrot.slane %v2910_v4, 1  ;;  %v603_v32 = vrot.slane %v2910_v4, 2 }
  0x57   : > { %1046 = vrot.lane.b32.xlu1 %v1008_v19, %s2487_s10  ;;  %v460_v19 = vld [vmem:[#allocation2 + $0x58] sm:$0x3] }
  0x58   : > { %1044 = vrot.lane.b32.xlu0 %v505_v29, %s2487_s10  ;;  %v598_v29 = vrot.slane %v2873_v17, 2  ;;  %v516_v24 = vrot.slane %v460_v19, 1 }
  0x5a   : > { %v599_v48 = vsel %vm586_vm3, %v597_v63, %v598_v29  ;;  %v601_v51 = vsel %vm586_vm3, %v598_v29, %v600_v14  ;;  %v1101_v46 = vsel %vm586_vm3, %v598_v29, %v1100_v23  ;;  %v517_v55 = vsel %vm497_vm4, %v514_v18, %v516_v24 }
  0x5b   : > { %546 = vrot.lane.b32.xlu1 %v510_v22, %s2487_s10  ;;  %v605_v63 = vrot.slane %v460_v19, 2  ;;  %v2201_v19 = vld [vmem:[%s3378_s3 + $0x28] sm:$0xf] }
  0x5c   : > { %1132 = vrot.lane.b32.xlu0 %v594_v3, %s2486_s9  ;;  %v2908_v3 = vld [vmem:[#allocation2 + $0x48] sm:$0xff] }
  0x5d   : > { %v513_v33 = vrot.slane %v2908_v3, 1  ;;  %v602_v30 = vrot.slane %v2908_v3, 2  ;;  %v606_v14 = vsel %vm586_vm3, %v603_v32, %v605_v63 }
  0x5f   : > { %548 = vrot.lane.b32.xlu1 %v512_v44, %s2487_s10  ;;  %v515_v47 = vsel %vm497_vm4, %v513_v33, %v514_v18  ;;  %v604_v44 = vsel %vm586_vm3, %v602_v30, %v603_v32  ;;  %v2200_v33 = vld [vmem:[%s3378_s3 + $0x20] sm:$0xff] }
  0x60   : > { %1134 = vrot.lane.b32.xlu0 %v1096_v38, %s2486_s9  ;;  %v964_v38 = vld [vmem:[#allocation2 + $0x58] sm:$0x3]  ;;  %v2940_v23 = vpack.c.bf16 %v2201_v19, %v2200_v33 }
  0x61   : > { %v1017_v50 = vrot.slane %v964_v38, 1  ;;  %v1105_v58 = vrot.slane %v964_v38, 2  ;;  %v1465_v38 = vld [vmem:[#allocation2 + $0x58] sm:$0x3] }
  0x62   : > { %2385 = vmatprep.subr.msk.bf16.mxu0 %vm2631_vm6, %v2940_v23 }
  0x63   : > { %637 = vrot.lane.b32.xlu1 %v601_v51, %s2486_s9  ;;  %v1018_v51 = vsel %vm497_vm4, %v514_v18, %v1017_v50  ;;  %v1106_v24 = vsel %vm586_vm3, %v603_v32, %v1105_v58 }
  0x64   : > { %635 = vrot.lane.b32.xlu0 %v599_v48, %s2486_s9 }
  0x67   : > { %1050 = vrot.lane.b32.xlu1 %v1013_v43, %s2487_s10  ;;  %v1462_v43 = vld [vmem:[#allocation2 + $0x40] sm:$0x3] }
  0x68   : > { %1048 = vrot.lane.b32.xlu0 %v510_v22, %s2487_s10  ;;  %v1511_v30 = vrot.slane %v1462_v43, 1 }
  0x6b   : > { %550 = vrot.lane.b32.xlu1 %v515_v47, %s2487_s10 }
  0x6c   : > { %1136 = vrot.lane.b32.xlu0 %v599_v48, %s2486_s9 }
  0x6f   : > { %552 = vrot.lane.b32.xlu1 %v517_v55, %s2487_s10  ;;  %v1599_v55 = vrot.slane %v1462_v43, 2 }
  0x70   : > { %1138 = vrot.lane.b32.xlu0 %v1101_v46, %s2486_s9  ;;  %v1512_v46 = vsel %vm497_vm4, %v2888_v21, %v1511_v30 }
  0x71   : > { %v1600_v63 = vsel %vm586_vm3, %v598_v29, %v1599_v55 }
  0x73   : > { %641 = vrot.lane.b32.xlu1 %v606_v14, %s2486_s9  ;;  %v1516_v14 = vrot.slane %v1465_v38, 1 }
  0x74   : > { %639 = vrot.lane.b32.xlu0 %v604_v44, %s2486_s9 }
  0x75   : > { %v1517_v21 = vsel %vm497_vm4, %v514_v18, %v1516_v14 }
  0x77   : > { %1054 = vrot.lane.b32.xlu1 %v1018_v51, %s2487_s10 }
  0x78   : > { %1052 = vrot.lane.b32.xlu0 %v515_v47, %s2487_s10 }
  0x7b   : > { %1142 = vrot.lane.b32.xlu1 %v1106_v24, %s2486_s9 }
  0x7c   : > { %1140 = vrot.lane.b32.xlu0 %v604_v44, %s2486_s9 }
  0x7f   : > { %1550 = vrot.lane.b32.xlu1 %v1512_v46, %s2487_s10 }
  0x80   : > { %1548 = vrot.lane.b32.xlu0 %v510_v22, %s2487_s10  ;;  %v1604_v22 = vrot.slane %v1465_v38, 2 }
  0x83   : > { %1056 = vrot.lane.b32.xlu1 %v2647_v41, %s2487_s10 }
  0x84   : > { %1636 = vrot.lane.b32.xlu0 %v599_v48, %s2486_s9 }
  0x87   : > { %1058 = vrot.lane.b32.xlu1 %v2758_v36, %s2487_s10  ;;  %v1605_v36 = vsel %vm586_vm3, %v603_v32, %v1604_v22 }
  0x88   : > { %1638 = vrot.lane.b32.xlu0 %v1600_v63, %s2486_s9 }
  0x8b   : > { %1146 = vrot.lane.b32.xlu1 %v2762_v37, %s2486_s9 }
  0x8c   : > { %1144 = vrot.lane.b32.xlu0 %v2643_v40, %s2486_s9 }
  0x8f   : > { %1554 = vrot.lane.b32.xlu1 %v1517_v21, %s2487_s10 }
  0x90   : > { %1552 = vrot.lane.b32.xlu0 %v515_v47, %s2487_s10 }
  0x93   : > { %1060 = vrot.lane.b32.xlu1 %v2674_v49, %s2487_s10 }
  0x94   : > { %1640 = vrot.lane.b32.xlu0 %v604_v44, %s2486_s9 }
  0x97   : > { %1062 = vrot.lane.b32.xlu1 %v2776_v53, %s2487_s10 }
  0x98   : > { %1642 = vrot.lane.b32.xlu0 %v1605_v36, %s2486_s9  ;;  %v3043_v36 = vld [vmem:[#allocation2 + $0xc8] sm:$0xff] }
  0x99   : > { %v644_v37 = vpop.permute.xlu1 %643 }
  0x9a   : > { %v555_v29 = vpop.permute.xlu0 %554 }
  0x9b   : > { %v683_v48 = vsel %vm392_vm0, %v2613_v27, %v555_v29  ;;  %1150 = vrot.lane.b32.xlu1 %v2780_v56, %s2486_s9  ;;  %v1040_v29 = vrot.slane %v3043_v36, 1 }
  0x9c   : > { %1148 = vrot.lane.b32.xlu0 %v2694_v57, %s2486_s9  ;;  %v699_v18 = vsel %vm432_vm7, %v683_v48, %v644_v37 }
  0x9d   : > { %2303 = vmatprep.mubr.msk.f32.mxu1 %vm725_vm8, %v699_v18  ;;  %v646_v47 = vpop.permute.xlu1 %645  ;;  %v979_v18 = vld [vmem:[#allocation2 + $0xd0] sm:$0x3] }
  0x9e   : > { %v557_v32 = vpop.permute.xlu0 %556 }
  0x9f   : > { %v684_v53 = vsel %vm392_vm0, %v2615_v28, %v557_v32  ;;  %1558 = vrot.lane.b32.xlu1 %v2784_v0, %s2487_s10  ;;  %v1042_v32 = vrot.slane %v979_v18, 1 }
  0xa0   : > { %1556 = vrot.lane.b32.xlu0 %v2647_v41, %s2487_s10  ;;  %v700_v44 = vsel %vm432_vm7, %v684_v53, %v646_v47 }
  0xa1   : > { %2304 = vmatmul.mubr.msk.f32.vlgmr.msra.gmra.mrb[0].mxu1 %vm725_vm8, %v700_v44  ;;  %v561_v56 = vpop.permute.xlu1 %560 }
  0xa2   : > { %v559_v50 = vpop.permute.xlu0 %558  ;;  %2382 = vmatpush3.bf16.msk.msra.mxu1 %vm2631_vm6, %v2858_v59  ;;  %v686_v41 = vsel %vm392_vm0, %v2628_v34, %v561_v56 }
  0xa3   : > { %1064 = vrot.lane.b32.xlu1 %v2714_v1, %s2487_s10  ;;  %v685_v0 = vsel %vm392_vm0, %v2635_v39, %v559_v50 }
  0xa4   : > { %1644 = vrot.lane.b32.xlu0 %v2643_v40, %s2486_s9 }
  0xa5   : > { %v650_v51 = vpop.permute.xlu1 %649 }
  0xa6   : > { %v648_v58 = vpop.permute.xlu0 %647  ;;  %v702_v43 = vsel %vm432_vm7, %v686_v41, %v650_v51  ;;  %v1130_v51 = vrot.slane %v979_v18, 2 }
  0xa7   : > { %v701_v33 = vsel %vm432_vm7, %v685_v0, %v648_v58  ;;  %1066 = vrot.lane.b32.xlu1 %v2796_v10, %s2487_s10  ;;  %v1043_v0 = vsel %vm497_vm4, %v1040_v29, %v1042_v32 }
  0xa8   : > { %2306 = vmatprep.mubr.msk.f32.mxu1 %vm725_vm8, %v701_v33  ;;  %1646 = vrot.lane.b32.xlu0 %v2788_v2, %s2486_s9 }
  0xa9   : > { %2307 = vmatmul.mubr.msk.f32.gmra.mrb[2].mxu1 %vm725_vm8, %v702_v43  ;;  %v565_v40 = vpop.permute.xlu1 %564 }
  0xaa   : > { %v563_v59 = vpop.permute.xlu0 %562  ;;  %v688_v10 = vsel %vm392_vm0, %v2677_v52, %v565_v40 }
  0xab   : > { %1154 = vrot.lane.b32.xlu1 %v2800_v11, %s2486_s9  ;;  %v687_v19 = vsel %vm392_vm0, %v2679_v54, %v563_v59 }
  0xac   : > { %1152 = vrot.lane.b32.xlu0 %v2725_v5, %s2486_s9 }
  0xad   : > { %v539_v30 = vpop.permute.xlu1 %538 }
  0xae   : > { %v652_v24 = vpop.permute.xlu0 %651 }
  0xaf   : > { %v703_v2 = vsel %vm432_vm7, %v687_v19, %v652_v24  ;;  %1562 = vrot.lane.b32.xlu1 %v2804_v31, %s2487_s10 }
  0xb0   : > { %2309 = vmatprep.mubr.msk.f32.mxu1 %vm725_vm8, %v703_v2  ;;  %1560 = vrot.lane.b32.xlu0 %v2674_v49, %s2487_s10  ;;  %v675_v49 = vsel %vm392_vm0, %v2697_v60, %v539_v30  ;;  %v3041_v60 = vld [vmem:[#allocation2 + $0xc0] sm:$0xff]  ;;  %v1480_v2 = vld [vmem:[#allocation2 + $0xd0] sm:$0x3] }
  0xb1   : > { %v541_v11 = vpop.permute.xlu1 %540  ;;  %v1039_v37 = vrot.slane %v3041_v60, 1 }
  0xb2   : > { %v654_v46 = vpop.permute.xlu0 %653 }
  0xb3   : > { %v704_v55 = vsel %vm432_vm7, %v688_v10, %v654_v46  ;;  %1068 = vrot.lane.b32.xlu1 %v2767_v45, %s2487_s10  ;;  %v1041_v47 = vsel %vm497_vm4, %v1039_v37, %v1040_v29 }
  0xb4   : > { %2310 = vmatmul.mubr.msk.f32.gmra.mrb[4].mxu1 %vm725_vm8, %v704_v55  ;;  %1648 = vrot.lane.b32.xlu0 %v2694_v57, %s2486_s9  ;;  %v676_v57 = vsel %vm392_vm0, %v2699_v61, %v541_v11  ;;  %v1541_v55 = vrot.slane %v1480_v2, 1 }
  0xb5   : > { %v567_v31 = vpop.permute.xlu1 %566 }
  0xb6   : > { %v628_v63 = vpop.permute.xlu0 %627  ;;  %v689_v61 = vsel %vm392_vm0, %v2727_v7, %v567_v31  ;;  %v1629_v31 = vrot.slane %v1480_v2, 2 }
  0xb7   : > { %v691_v38 = vsel %vm432_vm7, %v675_v49, %v628_v63  ;;  %1070 = vrot.lane.b32.xlu1 %v2817_v20, %s2487_s10  ;;  %v1542_v63 = vsel %vm497_vm4, %v1040_v29, %v1541_v55  ;;  %v2488_v29 = vmov 0.0  }
  0xb8   : > { %1650 = vrot.lane.b32.xlu0 %v2808_v15, %s2486_s9  ;;  %2291 = vmatprep.mubr.msk.f32.mxu0 %vm725_vm8, %v691_v38  ;;  %v3110_v38 = vld [vmem:[#allocation2 + $0xd8] sm:$0xff]  ;;  %442 = vst.msk [vmem:[#allocation3 + $0x48] sm:$0xff] %vm432_vm7, %v2488_v29  ;;  %433 = vst.msk [vmem:[#allocation3] sm:$0xff] %vm432_vm7, %v2488_v29 }
  0xb9   : > { %v569_v21 = vpop.permute.xlu1 %568  ;;  %434 = vst.msk [vmem:[#allocation3 + $0x8] sm:$0xff] %vm432_vm7, %v2488_v29  ;;  %435 = vst.msk [vmem:[#allocation3 + $0x10] sm:$0xff] %vm432_vm7, %v2488_v29  ;;  %v1631_v18 = vrot.slane %v3110_v38, 2 }
  0xba   : > { %v630_v14 = vpop.permute.xlu0 %629  ;;  %v690_v35 = vsel %vm392_vm0, %v2729_v8, %v569_v21  ;;  %v1543_v21 = vrot.slane %v3110_v38, 1  ;;  %436 = vst.msk [vmem:[#allocation3 + $0x18] sm:$0xff] %vm432_vm7, %v2488_v29  ;;  %437 = vst.msk [vmem:[#allocation3 + $0x20] sm:$0xff] %vm432_vm7, %v2488_v29 }
  0xbb   : > { %v692_v22 = vsel %vm432_vm7, %v676_v57, %v630_v14  ;;  %1158 = vrot.lane.b32.xlu1 %v2821_v42, %s2486_s9  ;;  %v3112_v57 = vld [vmem:[#allocation2 + $0xe0] sm:$0xff]  ;;  %438 = vst.msk [vmem:[#allocation3 + $0x28] sm:$0xff] %vm432_vm7, %v2488_v29  ;;  %439 = vst.msk [vmem:[#allocation3 + $0x30] sm:$0xff] %vm432_vm7, %v2488_v29 }
  0xbc   : > { %1156 = vrot.lane.b32.xlu0 %v2839_v26, %s2486_s9  ;;  %2292 = vmatmul.mubr.msk.f32.vlgmr.msra.gmra.mrb[0].mxu0 %vm725_vm8, %v692_v22  ;;  %v1544_v22 = vrot.slane %v3112_v57, 1  ;;  %440 = vst.msk [vmem:[#allocation3 + $0x38] sm:$0xff] %vm432_vm7, %v2488_v29  ;;  %441 = vst.msk [vmem:[#allocation3 + $0x40] sm:$0xff] %vm432_vm7, %v2488_v29 }
  0xbd   : > { %2388 = vmatpush3.bf16.msk.msra.mxu0 %vm2631_vm6, %v2940_v23  ;;  %v543_v20 = vpop.permute.xlu1 %542  ;;  %443 = vst.msk [vmem:[#allocation3 + $0x50] sm:$0xff] %vm432_vm7, %v2488_v29  ;;  %444 = vst.msk [vmem:[#allocation3 + $0x58] sm:$0xff] %vm432_vm7, %v2488_v29 }
  0xbe   : > { %v656_v15 = vpop.permute.xlu0 %655  ;;  %v677_v44 = vsel %vm392_vm0, %v2790_v6, %v543_v20  ;;  %445 = vst.msk [vmem:[#allocation3 + $0x60] sm:$0xff] %vm432_vm7, %v2488_v29  ;;  %446 = vst.msk [vmem:[#allocation3 + $0x68] sm:$0xff] %vm432_vm7, %v2488_v29 }
  0xbf   : > { %v705_v48 = vsel %vm432_vm7, %v689_v61, %v656_v15  ;;  %1566 = vrot.lane.b32.xlu1 %v2829_v12, %s2487_s10  ;;  %v1128_v12 = vrot.slane %v3043_v36, 2  ;;  %447 = vst.msk [vmem:[#allocation3 + $0x70] sm:$0xff] %vm432_vm7, %v2488_v29  ;;  %448 = vst.msk [vmem:[#allocation3 + $0x78] sm:$0xff] %vm432_vm7, %v2488_v29 }
  0xc0   : > { %1564 = vrot.lane.b32.xlu0 %v2714_v1, %s2487_s10  ;;  %2312 = vmatprep.mubr.msk.f32.mxu1 %vm725_vm8, %v705_v48  ;;  %v1127_v1 = vrot.slane %v3041_v60, 2  ;;  %v1545_v48 = vsel %vm497_vm4, %v1543_v21, %v1544_v22 }
  0xc1   : > { %v545_v23 = vpop.permute.xlu1 %544  ;;  %v1131_v59 = vsel %vm586_vm3, %v1128_v12, %v1130_v51  ;;  %v1630_v20 = vsel %vm586_vm3, %v1128_v12, %v1629_v31 }
  0xc2   : > { %v658_v42 = vpop.permute.xlu0 %657  ;;  %v678_v56 = vsel %vm392_vm0, %v2792_v9, %v545_v23  ;;  %v1129_v43 = vsel %vm586_vm3, %v1127_v1, %v1128_v12 }
  0xc3   : > { %v706_v53 = vsel %vm432_vm7, %v690_v35, %v658_v42  ;;  %1072 = vrot.lane.b32.xlu1 %v1041_v47, %s2487_s10  ;;  %v1632_v35 = vrot.slane %v3112_v57, 2 }
  0xc4   : > { %1652 = vrot.lane.b32.xlu0 %v2725_v5, %s2486_s9  ;;  %2313 = vmatmul.mubr.msk.f32.gmra.mrb[6].mxu1 %vm725_vm8, %v706_v53 }
  0xc5   : > { %v634_v41 = vpop.permute.xlu1 %633  ;;  %v1633_v12 = vsel %vm586_vm3, %v1631_v18, %v1632_v35 }
  0xc6   : > { %v632_v50 = vpop.permute.xlu0 %631  ;;  %v694_v58 = vsel %vm432_vm7, %v678_v56, %v634_v41 }
  0xc7   : > { %v693_v5 = vsel %vm432_vm7, %v677_v44, %v632_v50  ;;  %1074 = vrot.lane.b32.xlu1 %v1043_v0, %s2487_s10 }
  0xc8   : > { %1654 = vrot.lane.b32.xlu0 %v2835_v25, %s2486_s9  ;;  %2294 = vmatprep.mubr.msk.f32.mxu0 %vm725_vm8, %v693_v5 }
  0xc9   : > { %2295 = vmatmul.mubr.msk.f32.gmra.mrb[2].mxu0 %vm725_vm8, %v694_v58  ;;  %v1047_v40 = vpop.permute.xlu1 %1046 }
  0xca   : > { %v1045_v33 = vpop.permute.xlu0 %1044  ;;  %v1181_v10 = vsel %vm392_vm0, %v2792_v9, %v1047_v40 }
  0xcb   : > { %1162 = vrot.lane.b32.xlu1 %v1131_v59, %s2486_s9  ;;  %v1180_v19 = vsel %vm392_vm0, %v2790_v6, %v1045_v33 }
  0xcc   : > { %1160 = vrot.lane.b32.xlu0 %v1129_v43, %s2486_s9 }
  0xcd   : > { %v547_v24 = vpop.permute.xlu1 %546 }
  0xce   : > { %v1133_v25 = vpop.permute.xlu0 %1132 }
  0xcf   : > { %v1196_v30 = vsel %vm432_vm7, %v1180_v19, %v1133_v25  ;;  %1570 = vrot.lane.b32.xlu1 %v2864_v62, %s2487_s10 }
  0xd0   : > { %1568 = vrot.lane.b32.xlu0 %v2767_v45, %s2487_s10  ;;  %2319 = vmatprep.mubr.msk.f32.mxu1 %vm725_vm8, %v1196_v30  ;;  %v679_v45 = vsel %vm392_vm0, %v2871_v13, %v547_v24 }
  0xd1   : > { %v549_v11 = vpop.permute.xlu1 %548 }
  0xd2   : > { %v1135_v46 = vpop.permute.xlu0 %1134  ;;  %v680_v62 = vsel %vm392_vm0, %v2873_v17, %v549_v11 }
  0xd3   : > { %v1197_v6 = vsel %vm432_vm7, %v1181_v10, %v1135_v46  ;;  %1658 = vrot.lane.b32.xlu1 %v2880_v16, %s2486_s9  ;;  %v1483_v16 = vld [vmem:[#allocation2 + $0xe8] sm:$0x3] }
  0xd4   : > { %1656 = vrot.lane.b32.xlu0 %v2839_v26, %s2486_s9  ;;  %2320 = vmatmul.mubr.msk.f32.vlgmr.msra.gmra.mrb[8].mxu1 %vm725_vm8, %v1197_v6  ;;  %v1546_v37 = vrot.slane %v1483_v16, 1  ;;  %v1634_v53 = vrot.slane %v1483_v16, 2 }
  0xd5   : > { %v638_v49 = vpop.permute.xlu1 %637 }
  0xd6   : > { %v636_v9 = vpop.permute.xlu0 %635  ;;  %v696_v14 = vsel %vm432_vm7, %v680_v62, %v638_v49  ;;  %v1547_v32 = vsel %vm497_vm4, %v1544_v22, %v1546_v37  ;;  %v1635_v41 = vsel %vm586_vm3, %v1632_v35, %v1634_v53 }
  0xd7   : > { %v695_v26 = vsel %vm432_vm7, %v679_v45, %v636_v9  ;;  %1574 = vrot.lane.b32.xlu1 %v1542_v63, %s2487_s10 }
  0xd8   : > { %1572 = vrot.lane.b32.xlu0 %v1041_v47, %s2487_s10  ;;  %2297 = vmatprep.mubr.msk.f32.mxu0 %vm725_vm8, %v695_v26 }
  0xd9   : > { %2298 = vmatmul.mubr.msk.f32.gmra.mrb[4].mxu0 %vm725_vm8, %v696_v14  ;;  %v1051_v15 = vpop.permute.xlu1 %1050 }
  0xda   : > { %v1049_v61 = vpop.permute.xlu0 %1048  ;;  %v1183_v44 = vsel %vm392_vm0, %v2873_v17, %v1051_v15 }
  0xdb   : > { %1662 = vrot.lane.b32.xlu1 %v1630_v20, %s2486_s9  ;;  %v1182_v42 = vsel %vm392_vm0, %v2871_v13, %v1049_v61 }
  0xdc   : > { %1660 = vrot.lane.b32.xlu0 %v1129_v43, %s2486_s9 }
  0xdd   : > { %v551_v47 = vpop.permute.xlu1 %550 }
  0xde   : > { %v1137_v23 = vpop.permute.xlu0 %1136  ;;  %v681_v51 = vsel %vm392_vm0, %v2908_v3, %v551_v47 }
  0xdf   : > { %v1198_v1 = vsel %vm432_vm7, %v1182_v42, %v1137_v23  ;;  %1578 = vrot.lane.b32.xlu1 %v1547_v32, %s2487_s10 }
  0xe0   : > { %1576 = vrot.lane.b32.xlu0 %v1545_v48, %s2487_s10  ;;  %2322 = vmatprep.mubr.msk.f32.mxu1 %vm725_vm8, %v1198_v1  ;;  %s2162_s10 = sshll.u32 %s3393_s16, 5 }
  0xe1   : > { %v553_v50 = vpop.permute.xlu1 %552 }
  0xe2   : > { %v1139_v56 = vpop.permute.xlu0 %1138  ;;  %v682_v5 = vsel %vm392_vm0, %v2910_v4, %v553_v50 }
  0xe3   : > { %v1199_v0 = vsel %vm432_vm7, %v1183_v44, %v1139_v56  ;;  %1666 = vrot.lane.b32.xlu1 %v1635_v41, %s2486_s9 }
  0xe4   : > { %1664 = vrot.lane.b32.xlu0 %v1633_v12, %s2486_s9  ;;  %2323 = vmatmul.mubr.msk.f32.gmra.mrb[10].mxu1 %vm725_vm8, %v1199_v0  ;;  %v2439_v12 = vld [vmem:[#allocation2 + $0x60] sm:$0xff]  ;;  %s2161_s9 = sshll.u32 %s2467_s15, 4 }
  0xe5   : > { %v642_v43 = vpop.permute.xlu1 %641  ;;  %p361_p9 = scmp.lt.s32.totalorder %s2161_s9, 31 }
  0xe6   : > { %v640_v58 = vpop.permute.xlu0 %639  ;;  %v698_v40 = vsel %vm432_vm7, %v682_v5, %v642_v43 }
  0xe7   : > { %v697_v33 = vsel %vm432_vm7, %v681_v51, %v640_v58  ;;  %s3397_s9 = smov (!%p361_p9, %s2161_s9), 31 }
  0xe8   : > { %2300 = vmatprep.mubr.msk.f32.mxu0 %vm725_vm8, %v697_v33  ;;  %s364_s25 = sadd.s32 %s2162_s10, %s3397_s9 }
  0xe9   : > { %2301 = vmatmul.mubr.msk.f32.gmra.mrb[6].mxu0 %vm725_vm8, %v698_v40  ;;  %v1055_v19 = vpop.permute.xlu1 %1054  ;;  %s2163_s15 = sshll.u32 %s364_s25, 3 }
  0xea   : > { %v1053_v59 = vpop.permute.xlu0 %1052  ;;  %v1185_v24 = vsel %vm392_vm0, %v2910_v4, %v1055_v19  ;;  %s3304_s27 = scalar_lea.vmem %s3379_s4, %s2163_s15 }
  0xeb   : > { %v1184_v25 = vsel %vm392_vm0, %v2908_v3, %v1053_v59 }
  0xed   : > { %v1143_v2 = vpop.permute.xlu1 %1142 }
  0xee   : > { %v1141_v30 = vpop.permute.xlu0 %1140  ;;  %v1201_v46 = vsel %vm432_vm7, %v1185_v24, %v1143_v2 }
  0xef   : > { %v1200_v10 = vsel %vm432_vm7, %v1184_v25, %v1141_v30  ;;  %v2441_v30 = vld [vmem:[#allocation2 + $0x78] sm:$0xff] }
  0xf0   : > { %2325 = vmatprep.mubr.msk.f32.mxu1 %vm725_vm8, %v1200_v10 }
  0xf1   : > { %2326 = vmatmul.mubr.msk.f32.gmra.mrb[12].mxu1 %vm725_vm8, %v1201_v46  ;;  %v1551_v55 = vpop.permute.xlu1 %1550 }
  0xf2   : > { %v1549_v11 = vpop.permute.xlu0 %1548  ;;  %v1685_v49 = vsel %vm392_vm0, %v2873_v17, %v1551_v55 }
  0xf3   : > { %v1684_v6 = vsel %vm392_vm0, %v2871_v13, %v1549_v11 }
  0xf5   : > { %v1057_v62 = vpop.permute.xlu1 %1056 }
  0xf6   : > { %v1637_v45 = vpop.permute.xlu0 %1636  ;;  %v1186_v14 = vsel %vm392_vm0, %v2613_v27, %v1057_v62 }
  0xf7   : > { %v1700_v9 = vsel %vm432_vm7, %v1684_v6, %v1637_v45 }
  0xf8   : > { %2347 = vmatprep.mubr.msk.f32.mxu0 %vm725_vm8, %v1700_v9 }
  0xf9   : > { %v1059_v31 = vpop.permute.xlu1 %1058 }
  0xfa   : > { %v1639_v63 = vpop.permute.xlu0 %1638  ;;  %v1187_v13 = vsel %vm392_vm0, %v2615_v28, %v1059_v31 }
  0xfb   : > { %v1701_v26 = vsel %vm432_vm7, %v1685_v49, %v1639_v63 }
  0xfc   : > { %2348 = vmatmul.mubr.msk.f32.vlgmr.msra.gmra.mrb[8].mxu0 %vm725_vm8, %v1701_v26 }
  0xfd   : > { %v1147_v21 = vpop.permute.xlu1 %1146 }
  0xfe   : > { %v1145_v16 = vpop.permute.xlu0 %1144  ;;  %v1203_v61 = vsel %vm432_vm7, %v1187_v13, %v1147_v21 }
  0xff   : > { %v1202_v22 = vsel %vm432_vm7, %v1186_v14, %v1145_v16  ;;  %v2443_v16 = vld [vmem:[#allocation2 + $0x90] sm:$0xff] }
 0x100   : > { %2328 = vmatprep.mubr.msk.f32.mxu1 %vm725_vm8, %v1202_v22 }
 0x101   : > { %2329 = vmatmul.mubr.msk.f32.gmra.mrb[14].mxu1 %vm725_vm8, %v1203_v61  ;;  %v1555_v15 = vpop.permute.xlu1 %1554 }
 0x102   : > { %v1553_v17 = vpop.permute.xlu0 %1552  ;;  %v1687_v28 = vsel %vm392_vm0, %v2910_v4, %v1555_v15  ;;  %v2444_v15 = vld [vmem:[#allocation2 + $0x98] sm:$0xff] }
 0x103   : > { %v1686_v20 = vsel %vm392_vm0, %v2908_v3, %v1553_v17 }
 0x105   : > { %v1061_v27 = vpop.permute.xlu1 %1060 }
 0x106   : > { %v1641_v37 = vpop.permute.xlu0 %1640  ;;  %v1188_v42 = vsel %vm392_vm0, %v2635_v39, %v1061_v27 }
 0x107   : > { %v1702_v29 = vsel %vm432_vm7, %v1686_v20, %v1641_v37 }
 0x108   : > { %2350 = vmatprep.mubr.msk.f32.mxu0 %vm725_vm8, %v1702_v29 }
 0x109   : > { %v1063_v18 = vpop.permute.xlu1 %1062 }
 0x10a   : > { %v1643_v48 = vpop.permute.xlu0 %1642  ;;  %v1189_v3 = vsel %vm392_vm0, %v2628_v34, %v1063_v18  ;;  %v2440_v34 = vld [vmem:[#allocation2 + $0x68] sm:$0xff] }
 0x10b   : > { %v1703_v35 = vsel %vm432_vm7, %v1687_v28, %v1643_v48 }
 0x10c   : > { %2351 = vmatmul.mubr.msk.f32.gmra.mrb[10].mxu0 %vm725_vm8, %v1703_v35 }
 0x10d   : > { %v1151_v47 = vpop.permute.xlu1 %1150 }
 0x10e   : > { %v1149_v23 = vpop.permute.xlu0 %1148  ;;  %v1205_v53 = vsel %vm432_vm7, %v1189_v3, %v1151_v47 }
 0x10f   : > { %v1204_v32 = vsel %vm432_vm7, %v1188_v42, %v1149_v23 }
 0x110   : > { %2331 = vmatprep.mubr.msk.f32.mxu1 %vm725_vm8, %v1204_v32 }
 0x111   : > { %2332 = vmatmul.mubr.msk.f32.gmra.mrb[16].mxu1 %vm725_vm8, %v1205_v53  ;;  %v1559_v1 = vpop.permute.xlu1 %1558 }
 0x112   : > { %v1557_v4 = vpop.permute.xlu0 %1556  ;;  %v1689_v41 = vsel %vm392_vm0, %v2440_v34, %v1559_v1 }
 0x113   : > { %v1688_v44 = vsel %vm392_vm0, %v2439_v12, %v1557_v4 }
 0x115   : > { %v1065_v39 = vpop.permute.xlu1 %1064 }
 0x116   : > { %v1645_v56 = vpop.permute.xlu0 %1644  ;;  %v1190_v58 = vsel %vm392_vm0, %v2679_v54, %v1065_v39 }
 0x117   : > { %v1704_v50 = vsel %vm432_vm7, %v1688_v44, %v1645_v56 }
 0x118   : > { %2353 = vmatprep.mubr.msk.f32.mxu0 %vm725_vm8, %v1704_v50 }
 0x119   : > { %v1067_v5 = vpop.permute.xlu1 %1066 }
 0x11a   : > { %v1647_v0 = vpop.permute.xlu0 %1646  ;;  %v1191_v33 = vsel %vm392_vm0, %v2677_v52, %v1067_v5  ;;  %v2442_v52 = vld [vmem:[#allocation2 + $0x80] sm:$0xff] }
 0x11b   : > { %v1705_v51 = vsel %vm432_vm7, %v1689_v41, %v1647_v0 }
 0x11c   : > { %2354 = vmatmul.mubr.msk.f32.gmra.mrb[12].mxu0 %vm725_vm8, %v1705_v51 }
 0x11d   : > { %v1155_v59 = vpop.permute.xlu1 %1154 }
 0x11e   : > { %v1153_v43 = vpop.permute.xlu0 %1152  ;;  %v1207_v19 = vsel %vm432_vm7, %v1191_v33, %v1155_v59  ;;  %v716_v59 = vld [vmem:[#allocation3 + $0x48] sm:$0xff] }
 0x11f   : > { %v1206_v40 = vsel %vm432_vm7, %v1190_v58, %v1153_v43 }
 0x120   : > { %2334 = vmatprep.mubr.msk.f32.mxu1 %vm725_vm8, %v1206_v40 }
 0x121   : > { %2335 = vmatmul.mubr.msk.f32.gmra.mrb[18].mxu1 %vm725_vm8, %v1207_v19  ;;  %v1563_v24 = vpop.permute.xlu1 %1562  ;;  %v715_v19 = vld [vmem:[#allocation3 + $0x40] sm:$0xff] }
 0x122   : > { %v1561_v25 = vpop.permute.xlu0 %1560  ;;  %v1691_v11 = vsel %vm392_vm0, %v2442_v52, %v1563_v24 }
 0x123   : > { %v1690_v2 = vsel %vm392_vm0, %v2441_v30, %v1561_v25 }
 0x125   : > { %v1069_v46 = vpop.permute.xlu1 %1068 }
 0x126   : > { %v1649_v10 = vpop.permute.xlu0 %1648  ;;  %v1192_v62 = vsel %vm392_vm0, %v2727_v7, %v1069_v46 }
 0x127   : > { %v1706_v54 = vsel %vm432_vm7, %v1690_v2, %v1649_v10 }
 0x128   : > { %2356 = vmatprep.mubr.msk.f32.mxu0 %vm725_vm8, %v1706_v54 }
 0x129   : > { %v1071_v45 = vpop.permute.xlu1 %1070 }
 0x12a   : > { %v1651_v55 = vpop.permute.xlu0 %1650  ;;  %v1193_v49 = vsel %vm392_vm0, %v2729_v8, %v1071_v45 }
 0x12b   : > { %v1707_v6 = vsel %vm432_vm7, %v1691_v11, %v1651_v55  ;;  %v720_v11 = vld [vmem:[#allocation3 + $0x68] sm:$0xff]  ;;  %v719_v55 = vld [vmem:[#allocation3 + $0x60] sm:$0xff] }
 0x12c   : > { %2357 = vmatmul.mubr.msk.f32.gmra.mrb[14].mxu0 %vm725_vm8, %v1707_v6 }
 0x12d   : > { %v1159_v31 = vpop.permute.xlu1 %1158 }
 0x12e   : > { %v1157_v9 = vpop.permute.xlu0 %1156  ;;  %v1209_v26 = vsel %vm432_vm7, %v1193_v49, %v1159_v31  ;;  %v708_v49 = vld [vmem:[#allocation3 + $0x8] sm:$0xff] }
 0x12f   : > { %v1208_v63 = vsel %vm432_vm7, %v1192_v62, %v1157_v9 }
 0x130   : > { %2337 = vmatprep.mubr.msk.f32.mxu1 %vm725_vm8, %v1208_v63  ;;  %v707_v63 = vld [vmem:[#allocation3] sm:$0xff] }
 0x131   : > { %2338 = vmatmul.mubr.msk.f32.gmra.mrb[20].mxu1 %vm725_vm8, %v1209_v26  ;;  %v1567_v13 = vpop.permute.xlu1 %1566 }
 0x132   : > { %v1565_v14 = vpop.permute.xlu0 %1564  ;;  %v1693_v20 = vsel %vm392_vm0, %v2444_v15, %v1567_v13 }
 0x133   : > { %v1692_v21 = vsel %vm392_vm0, %v2443_v16, %v1565_v14  ;;  %v722_v16 = vld [vmem:[#allocation3 + $0x78] sm:$0xff] }
 0x135   : > { %v1073_v17 = vpop.permute.xlu1 %1072 }
 0x136   : > { %v1653_v22 = vpop.permute.xlu0 %1652  ;;  %v1194_v28 = vsel %vm392_vm0, %v3041_v60, %v1073_v17 }
 0x137   : > { %v1708_v61 = vsel %vm432_vm7, %v1692_v21, %v1653_v22  ;;  %v721_v21 = vld [vmem:[#allocation3 + $0x70] sm:$0xff] }
 0x138   : > { %2359 = vmatprep.mubr.msk.f32.mxu0 %vm725_vm8, %v1708_v61 }
 0x139   : > { %v1075_v29 = vpop.permute.xlu1 %1074 }
 0x13a   : > { %v1655_v37 = vpop.permute.xlu0 %1654  ;;  %v1195_v18 = vsel %vm392_vm0, %v3043_v36, %v1075_v29 }
 0x13b   : > { %v1709_v27 = vsel %vm432_vm7, %v1693_v20, %v1655_v37  ;;  %v710_v20 = vld [vmem:[#allocation3 + $0x18] sm:$0xff]  ;;  %v709_v37 = vld [vmem:[#allocation3 + $0x10] sm:$0xff] }
 0x13c   : > { %2360 = vmatmul.mubr.msk.f32.gmra.mrb[16].mxu0 %vm725_vm8, %v1709_v27 }
 0x13d   : > { %v1163_v42 = vpop.permute.xlu1 %1162 }
 0x13e   : > { %v1161_v48 = vpop.permute.xlu0 %1160  ;;  %v1211_v3 = vsel %vm432_vm7, %v1195_v18, %v1163_v42 }
 0x13f   : > { %v1210_v35 = vsel %vm432_vm7, %v1194_v28, %v1161_v48 }
 0x140   : > { %2340 = vmatprep.mubr.msk.f32.mxu1 %vm725_vm8, %v1210_v35 }
 0x141   : > { %2341 = vmatmul.mubr.msk.f32.gmra.mrb[22].mxu1 %vm725_vm8, %v1211_v3  ;;  %v1571_v47 = vpop.permute.xlu1 %1570 }
 0x142   : > { %v1569_v23 = vpop.permute.xlu0 %1568  ;;  %v1695_v4 = vsel %vm392_vm0, %v2729_v8, %v1571_v47 }
 0x143   : > { %v1694_v32 = vsel %vm392_vm0, %v2727_v7, %v1569_v23 }
 0x145   : > { %v1659_v12 = vpop.permute.xlu1 %1658 }
 0x146   : > { %v1657_v53 = vpop.permute.xlu0 %1656  ;;  %v1711_v44 = vsel %vm432_vm7, %v1695_v4, %v1659_v12 }
 0x147   : > { %v1710_v1 = vsel %vm432_vm7, %v1694_v32, %v1657_v53  ;;  %v712_v32 = vld [vmem:[#allocation3 + $0x28] sm:$0xff]  ;;  %v711_v53 = vld [vmem:[#allocation3 + $0x20] sm:$0xff] }
 0x148   : > { %2362 = vmatprep.mubr.msk.f32.mxu0 %vm725_vm8, %v1710_v1 }
 0x149   : > { %2363 = vmatmul.mubr.msk.f32.gmra.mrb[18].mxu0 %vm725_vm8, %v1711_v44  ;;  %v1575_v39 = vpop.permute.xlu1 %1574 }
 0x14a   : > { %v1573_v56 = vpop.permute.xlu0 %1572  ;;  %v1697_v7 = vsel %vm392_vm0, %v3043_v36, %v1575_v39 }
 0x14b   : > { %v1696_v50 = vsel %vm392_vm0, %v3041_v60, %v1573_v56 }
 0x14d   : > { %v1663_v41 = vpop.permute.xlu1 %1662 }
 0x14e   : > { %v1661_v34 = vpop.permute.xlu0 %1660  ;;  %v1713_v0 = vsel %vm432_vm7, %v1697_v7, %v1663_v41  ;;  %v714_v41 = vld [vmem:[#allocation3 + $0x38] sm:$0xff] }
 0x14f   : > { %v1712_v8 = vsel %vm432_vm7, %v1696_v50, %v1661_v34 }
 0x150   : > { %2365 = vmatprep.mubr.msk.f32.mxu0 %vm725_vm8, %v1712_v8 }
 0x151   : > { %2366 = vmatmul.mubr.msk.f32.gmra.mrb[20].mxu0 %vm725_vm8, %v1713_v0  ;;  %v1579_v5 = vpop.permute.xlu1 %1578  ;;  %v713_v0 = vld [vmem:[#allocation3 + $0x30] sm:$0xff] }
 0x152   : > { %v1577_v51 = vpop.permute.xlu0 %1576  ;;  %v1699_v60 = vsel %vm392_vm0, %v3112_v57, %v1579_v5  ;;  %v717_v57 = vld [vmem:[#allocation3 + $0x50] sm:$0xff] }
 0x153   : > { %v1698_v58 = vsel %vm392_vm0, %v3110_v38, %v1577_v51  ;;  %v718_v38 = vld [vmem:[#allocation3 + $0x58] sm:$0xff] }
 0x155   : > { %v1667_v33 = vpop.permute.xlu1 %1666 }
 0x156   : > { %v1665_v43 = vpop.permute.xlu0 %1664  ;;  %v1715_v40 = vsel %vm432_vm7, %v1699_v60, %v1667_v33 }
 0x157   : > { %v1714_v36 = vsel %vm432_vm7, %v1698_v58, %v1665_v43 }
 0x158   : > { %2368 = vmatprep.mubr.msk.f32.mxu0 %vm725_vm8, %v1714_v36 }
 0x159   : > { %2369 = vmatmul.mubr.msk.f32.gmra.mrb[22].mxu0 %vm725_vm8, %v1715_v40 }
 0x174   : > { %v2305_v25 = vpop.f32.mrb[0].mxu1 }
 0x175   : > { %v932_v24 = vadd.f32 %v2305_v25, %v716_v59  ;;  %v884_v30 = vpop.f32.mrb[1].mxu1 }
 0x176   : > { %v931_v2 = vadd.f32 %v884_v30, %v715_v19 }
 0x177   : > { %948 = vst.msk [vmem:[#allocation3 + $0x48] sm:$0xff] %vm432_vm7, %v932_v24 }
 0x178   : > { %947 = vst.msk [vmem:[#allocation3 + $0x40] sm:$0xff] %vm432_vm7, %v931_v2 }
 0x17c   : > { %v2308_v10 = vpop.f32.mrb[2].mxu1 }
 0x17d   : > { %v934_v54 = vadd.f32 %v2308_v10, %v718_v38  ;;  %v894_v46 = vpop.f32.mrb[3].mxu1 }
 0x17e   : > { %v933_v52 = vadd.f32 %v894_v46, %v717_v57 }
 0x17f   : > { %950 = vst.msk [vmem:[#allocation3 + $0x58] sm:$0xff] %vm432_vm7, %v934_v54 }
 0x180   : > { %949 = vst.msk [vmem:[#allocation3 + $0x50] sm:$0xff] %vm432_vm7, %v933_v52 }
 0x187   : > { %v2311_v6 = vpop.f32.mrb[4].mxu1 }
 0x188   : > { %v936_v45 = vadd.f32 %v2311_v6, %v720_v11  ;;  %v904_v62 = vpop.f32.mrb[5].mxu1 }
 0x189   : > { %v935_v9 = vadd.f32 %v904_v62, %v719_v55 }
 0x18a   : > { %952 = vst.msk [vmem:[#allocation3 + $0x68] sm:$0xff] %vm432_vm7, %v936_v45 }
 0x18b   : > { %951 = vst.msk [vmem:[#allocation3 + $0x60] sm:$0xff] %vm432_vm7, %v935_v9 }
 0x18f   : > { %v2293_v31 = vpop.f32.mrb[0].mxu0 }
 0x190   : > { %v924_v26 = vadd.f32 %v2293_v31, %v708_v49  ;;  %v844_v14 = vpop.f32.mrb[1].mxu0 }
 0x191   : > { %v923_v13 = vadd.f32 %v844_v14, %v707_v63 }
 0x192   : > { %940 = vst.msk [vmem:[#allocation3 + $0x8] sm:$0xff] %vm432_vm7, %v924_v26 }
 0x193   : > { %939 = vst.msk [vmem:[#allocation3] sm:$0xff] %vm432_vm7, %v923_v13 }
 0x197   : > { %v2314_v22 = vpop.f32.mrb[6].mxu1 }
 0x198   : > { %v938_v61 = vadd.f32 %v2314_v22, %v722_v16  ;;  %v914_v17 = vpop.f32.mrb[7].mxu1  ;;  %v1221_v16 = vld [vmem:[#allocation3 + $0x48] sm:$0xff] }
 0x199   : > { %v937_v15 = vadd.f32 %v914_v17, %v721_v21  ;;  %v1213_v18 = vld [vmem:[#allocation3 + $0x8] sm:$0xff] }
 0x19a   : > { %954 = vst.msk [vmem:[#allocation3 + $0x78] sm:$0xff] %vm432_vm7, %v938_v61  ;;  %v1212_v3 = vld [vmem:[#allocation3] sm:$0xff] }
 0x19b   : > { %953 = vst.msk [vmem:[#allocation3 + $0x70] sm:$0xff] %vm432_vm7, %v937_v15  ;;  %v1220_v61 = vld [vmem:[#allocation3 + $0x40] sm:$0xff] }
 0x19c   : > { %v2296_v27 = vpop.f32.mrb[2].mxu0 }
 0x19d   : > { %v926_v29 = vadd.f32 %v2296_v27, %v710_v20  ;;  %v854_v28 = vpop.f32.mrb[3].mxu0 }
 0x19e   : > { %v925_v48 = vadd.f32 %v854_v28, %v709_v37 }
 0x19f   : > { %942 = vst.msk [vmem:[#allocation3 + $0x18] sm:$0xff] %vm432_vm7, %v926_v29 }
 0x1a0   : > { %941 = vst.msk [vmem:[#allocation3 + $0x10] sm:$0xff] %vm432_vm7, %v925_v48 }
 0x1a6   : > { %v1215_v56 = vld [vmem:[#allocation3 + $0x18] sm:$0xff] }
 0x1a7   : > { %v2321_v35 = vpop.f32.mrb[8].mxu1  ;;  %v1214_v34 = vld [vmem:[#allocation3 + $0x10] sm:$0xff] }
 0x1a8   : > { %v1428_v42 = vadd.f32 %v2321_v35, %v1213_v18  ;;  %v1348_v23 = vpop.f32.mrb[9].mxu1 }
 0x1a9   : > { %v1427_v47 = vadd.f32 %v1348_v23, %v1212_v3  ;;  %v1223_v23 = vld [vmem:[#allocation3 + $0x58] sm:$0xff] }
 0x1aa   : > { %1444 = vst.msk [vmem:[#allocation3 + $0x8] sm:$0xff] %vm432_vm7, %v1428_v42 }
 0x1ab   : > { %1443 = vst.msk [vmem:[#allocation3] sm:$0xff] %vm432_vm7, %v1427_v47 }
 0x1ac   : > { %v2299_v4 = vpop.f32.mrb[4].mxu0 }
 0x1ad   : > { %v928_v1 = vadd.f32 %v2299_v4, %v712_v32  ;;  %v864_v12 = vpop.f32.mrb[5].mxu0 }
 0x1ae   : > { %v927_v44 = vadd.f32 %v864_v12, %v711_v53  ;;  %v1222_v53 = vld [vmem:[#allocation3 + $0x50] sm:$0xff] }
 0x1af   : > { %944 = vst.msk [vmem:[#allocation3 + $0x28] sm:$0xff] %vm432_vm7, %v928_v1 }
 0x1b0   : > { %943 = vst.msk [vmem:[#allocation3 + $0x20] sm:$0xff] %vm432_vm7, %v927_v44 }
 0x1b1   : > { %v1717_v25 = vld [vmem:[#allocation3 + $0x8] sm:$0xff] }
 0x1b2   : > { %v1716_v2 = vld [vmem:[#allocation3] sm:$0xff] }
 0x1b6   : > { %v1217_v60 = vld [vmem:[#allocation3 + $0x28] sm:$0xff] }
 0x1b7   : > { %v2324_v39 = vpop.f32.mrb[10].mxu1  ;;  %v1216_v40 = vld [vmem:[#allocation3 + $0x20] sm:$0xff] }
 0x1b8   : > { %v1430_v50 = vadd.f32 %v2324_v39, %v1215_v56  ;;  %v1358_v7 = vpop.f32.mrb[11].mxu1 }
 0x1b9   : > { %v1429_v8 = vadd.f32 %v1358_v7, %v1214_v34 }
 0x1ba   : > { %1446 = vst.msk [vmem:[#allocation3 + $0x18] sm:$0xff] %vm432_vm7, %v1430_v50 }
 0x1bb   : > { %1445 = vst.msk [vmem:[#allocation3 + $0x10] sm:$0xff] %vm432_vm7, %v1429_v8 }
 0x1bc   : > { %v2302_v51 = vpop.f32.mrb[6].mxu0 }
 0x1bd   : > { %v930_v5 = vadd.f32 %v2302_v51, %v714_v41  ;;  %v874_v58 = vpop.f32.mrb[7].mxu0  ;;  %v1225_v51 = vld [vmem:[#allocation3 + $0x68] sm:$0xff] }
 0x1be   : > { %v929_v43 = vadd.f32 %v874_v58, %v713_v0 }
 0x1bf   : > { %946 = vst.msk [vmem:[#allocation3 + $0x38] sm:$0xff] %vm432_vm7, %v930_v5 }
 0x1c0   : > { %945 = vst.msk [vmem:[#allocation3 + $0x30] sm:$0xff] %vm432_vm7, %v929_v43  ;;  %v1224_v43 = vld [vmem:[#allocation3 + $0x60] sm:$0xff] }
 0x1c1   : > { %v1719_v49 = vld [vmem:[#allocation3 + $0x18] sm:$0xff] }
 0x1c2   : > { %v1718_v26 = vld [vmem:[#allocation3 + $0x10] sm:$0xff] }
 0x1c4   : > { %v2327_v36 = vpop.f32.mrb[12].mxu1 }
 0x1c5   : > { %v1432_v33 = vadd.f32 %v2327_v36, %v1217_v60  ;;  %v1368_v59 = vpop.f32.mrb[13].mxu1 }
 0x1c6   : > { %v1431_v19 = vadd.f32 %v1368_v59, %v1216_v40  ;;  %v1219_v10 = vld [vmem:[#allocation3 + $0x38] sm:$0xff] }
 0x1c7   : > { %1448 = vst.msk [vmem:[#allocation3 + $0x28] sm:$0xff] %vm432_vm7, %v1432_v33  ;;  %v1218_v52 = vld [vmem:[#allocation3 + $0x30] sm:$0xff] }
 0x1c8   : > { %1447 = vst.msk [vmem:[#allocation3 + $0x20] sm:$0xff] %vm432_vm7, %v1431_v19 }
 0x1ce   : > { %v1721_v28 = vld [vmem:[#allocation3 + $0x28] sm:$0xff] }
 0x1cf   : > { %v2349_v24 = vpop.f32.mrb[8].mxu0  ;;  %v1720_v35 = vld [vmem:[#allocation3 + $0x20] sm:$0xff] }
 0x1d0   : > { %v1932_v30 = vadd.f32 %v2349_v24, %v1717_v25  ;;  %v1852_v38 = vpop.f32.mrb[9].mxu0 }
 0x1d1   : > { %v1931_v57 = vadd.f32 %v1852_v38, %v1716_v2 }
 0x1d2   : > { %1948 = vst.msk [vmem:[#allocation3 + $0x8] sm:$0xff] %vm432_vm7, %v1932_v30 }
 0x1d3   : > { %1947 = vst.msk [vmem:[#allocation3] sm:$0xff] %vm432_vm7, %v1931_v57 }
 0x1d4   : > { %v2330_v54 = vpop.f32.mrb[14].mxu1 }
 0x1d5   : > { %v1434_v46 = vadd.f32 %v2330_v54, %v1219_v10  ;;  %v1378_v11 = vpop.f32.mrb[15].mxu1  ;;  %v1227_v10 = vld [vmem:[#allocation3 + $0x78] sm:$0xff] }
 0x1d6   : > { %v1433_v55 = vadd.f32 %v1378_v11, %v1218_v52  ;;  %v1226_v52 = vld [vmem:[#allocation3 + $0x70] sm:$0xff] }
 0x1d7   : > { %1450 = vst.msk [vmem:[#allocation3 + $0x38] sm:$0xff] %vm432_vm7, %v1434_v46 }
 0x1d8   : > { %1449 = vst.msk [vmem:[#allocation3 + $0x30] sm:$0xff] %vm432_vm7, %v1433_v55 }
 0x1d9   : > { %v1964_v6 = vld [vmem:[#allocation3 + $0x8] sm:$0xff] }
 0x1da   : > { %v1980_v45 = vmax.f32 %v1964_v6, 0.0  ;;  %v1963_v62 = vld [vmem:[#allocation3] sm:$0xff] }
 0x1db   : > { %v1979_v9 = vmax.f32 %v1963_v62, 0.0 }
 0x1dc   : > { %1996 = vst.msk [vmem:[%s3304_s27 + $0x8] sm:$0xff] %vm432_vm7, %v1980_v45 }
 0x1dd   : > { %1995 = vst.msk [vmem:[%s3304_s27] sm:$0xff] %vm432_vm7, %v1979_v9 }
 0x1de   : > { %v1723_v50 = vld [vmem:[#allocation3 + $0x38] sm:$0xff] }
 0x1df   : > { %v2352_v63 = vpop.f32.mrb[10].mxu0  ;;  %v1722_v8 = vld [vmem:[#allocation3 + $0x30] sm:$0xff] }
 0x1e0   : > { %v1934_v31 = vadd.f32 %v2352_v63, %v1719_v49  ;;  %v1862_v14 = vpop.f32.mrb[11].mxu0 }
 0x1e1   : > { %v1933_v13 = vadd.f32 %v1862_v14, %v1718_v26 }
 0x1e2   : > { %1950 = vst.msk [vmem:[#allocation3 + $0x18] sm:$0xff] %vm432_vm7, %v1934_v31 }
 0x1e3   : > { %1949 = vst.msk [vmem:[#allocation3 + $0x10] sm:$0xff] %vm432_vm7, %v1933_v13 }
 0x1e4   : > { %v2333_v21 = vpop.f32.mrb[16].mxu1 }
 0x1e5   : > { %v1436_v22 = vadd.f32 %v2333_v21, %v1221_v16  ;;  %v1388_v17 = vpop.f32.mrb[17].mxu1 }
 0x1e6   : > { %v1435_v15 = vadd.f32 %v1388_v17, %v1220_v61 }
 0x1e7   : > { %1452 = vst.msk [vmem:[#allocation3 + $0x48] sm:$0xff] %vm432_vm7, %v1436_v22 }
 0x1e8   : > { %1451 = vst.msk [vmem:[#allocation3 + $0x40] sm:$0xff] %vm432_vm7, %v1435_v15 }
 0x1e9   : > { %v1966_v20 = vld [vmem:[#allocation3 + $0x18] sm:$0xff] }
 0x1ea   : > { %v1982_v37 = vmax.f32 %v1966_v20, 0.0  ;;  %v1965_v27 = vld [vmem:[#allocation3 + $0x10] sm:$0xff] }
 0x1eb   : > { %v1981_v29 = vmax.f32 %v1965_v27, 0.0 }
 0x1ec   : > { %1998 = vst.msk [vmem:[%s3304_s27 + $0x18] sm:$0xff] %vm432_vm7, %v1982_v37 }
 0x1ed   : > { %1997 = vst.msk [vmem:[%s3304_s27 + $0x10] sm:$0xff] %vm432_vm7, %v1981_v29 }
 0x1ee   : > { %v1725_v25 = vld [vmem:[#allocation3 + $0x48] sm:$0xff] }
 0x1ef   : > { %v2355_v48 = vpop.f32.mrb[12].mxu0  ;;  %v1724_v2 = vld [vmem:[#allocation3 + $0x40] sm:$0xff] }
 0x1f0   : > { %v1936_v18 = vadd.f32 %v2355_v48, %v1721_v28  ;;  %v1872_v42 = vpop.f32.mrb[13].mxu0 }
 0x1f1   : > { %v1935_v3 = vadd.f32 %v1872_v42, %v1720_v35 }
 0x1f2   : > { %1952 = vst.msk [vmem:[#allocation3 + $0x28] sm:$0xff] %vm432_vm7, %v1936_v18 }
 0x1f3   : > { %1951 = vst.msk [vmem:[#allocation3 + $0x20] sm:$0xff] %vm432_vm7, %v1935_v3 }
 0x1f4   : > { %v2336_v47 = vpop.f32.mrb[18].mxu1 }
 0x1f5   : > { %v1438_v32 = vadd.f32 %v2336_v47, %v1223_v23  ;;  %v1398_v4 = vpop.f32.mrb[19].mxu1 }
 0x1f6   : > { %v1437_v1 = vadd.f32 %v1398_v4, %v1222_v53 }
 0x1f7   : > { %1454 = vst.msk [vmem:[#allocation3 + $0x58] sm:$0xff] %vm432_vm7, %v1438_v32 }
 0x1f8   : > { %1453 = vst.msk [vmem:[#allocation3 + $0x50] sm:$0xff] %vm432_vm7, %v1437_v1 }
 0x1f9   : > { %v1968_v12 = vld [vmem:[#allocation3 + $0x28] sm:$0xff] }
 0x1fa   : > { %v1984_v44 = vmax.f32 %v1968_v12, 0.0  ;;  %v1967_v56 = vld [vmem:[#allocation3 + $0x20] sm:$0xff] }
 0x1fb   : > { %v1983_v39 = vmax.f32 %v1967_v56, 0.0 }
 0x1fc   : > { %2000 = vst.msk [vmem:[%s3304_s27 + $0x28] sm:$0xff] %vm432_vm7, %v1984_v44 }
 0x1fd   : > { %1999 = vst.msk [vmem:[%s3304_s27 + $0x20] sm:$0xff] %vm432_vm7, %v1983_v39 }
 0x1fe   : > { %v1727_v49 = vld [vmem:[#allocation3 + $0x58] sm:$0xff] }
 0x1ff   : > { %v2358_v34 = vpop.f32.mrb[14].mxu0  ;;  %v1726_v26 = vld [vmem:[#allocation3 + $0x50] sm:$0xff] }
 0x200   : > { %v1938_v7 = vadd.f32 %v2358_v34, %v1723_v50  ;;  %v1882_v41 = vpop.f32.mrb[15].mxu0 }
 0x201   : > { %v1937_v0 = vadd.f32 %v1882_v41, %v1722_v8 }
 0x202   : > { %1954 = vst.msk [vmem:[#allocation3 + $0x38] sm:$0xff] %vm432_vm7, %v1938_v7 }
 0x203   : > { %1953 = vst.msk [vmem:[#allocation3 + $0x30] sm:$0xff] %vm432_vm7, %v1937_v0 }
 0x204   : > { %v2339_v5 = vpop.f32.mrb[20].mxu1 }
 0x205   : > { %v1440_v58 = vadd.f32 %v2339_v5, %v1225_v51  ;;  %v1408_v60 = vpop.f32.mrb[21].mxu1 }
 0x206   : > { %v1439_v36 = vadd.f32 %v1408_v60, %v1224_v43 }
 0x207   : > { %1456 = vst.msk [vmem:[#allocation3 + $0x68] sm:$0xff] %vm432_vm7, %v1440_v58 }
 0x208   : > { %1455 = vst.msk [vmem:[#allocation3 + $0x60] sm:$0xff] %vm432_vm7, %v1439_v36 }
 0x209   : > { %v1970_v33 = vld [vmem:[#allocation3 + $0x38] sm:$0xff] }
 0x20a   : > { %v1986_v40 = vmax.f32 %v1970_v33, 0.0  ;;  %v1969_v59 = vld [vmem:[#allocation3 + $0x30] sm:$0xff] }
 0x20b   : > { %v1985_v19 = vmax.f32 %v1969_v59, 0.0 }
 0x20c   : > { %2002 = vst.msk [vmem:[%s3304_s27 + $0x38] sm:$0xff] %vm432_vm7, %v1986_v40 }
 0x20d   : > { %2001 = vst.msk [vmem:[%s3304_s27 + $0x30] sm:$0xff] %vm432_vm7, %v1985_v19 }
 0x20e   : > { %v1729_v16 = vld [vmem:[#allocation3 + $0x68] sm:$0xff] }
 0x20f   : > { %v2361_v24 = vpop.f32.mrb[16].mxu0  ;;  %v1728_v61 = vld [vmem:[#allocation3 + $0x60] sm:$0xff] }
 0x210   : > { %v1940_v30 = vadd.f32 %v2361_v24, %v1725_v25  ;;  %v1892_v38 = vpop.f32.mrb[17].mxu0 }
 0x211   : > { %v1939_v57 = vadd.f32 %v1892_v38, %v1724_v2 }
 0x212   : > { %1956 = vst.msk [vmem:[#allocation3 + $0x48] sm:$0xff] %vm432_vm7, %v1940_v30 }
 0x213   : > { %1955 = vst.msk [vmem:[#allocation3 + $0x40] sm:$0xff] %vm432_vm7, %v1939_v57 }
 0x214   : > { %v2342_v54 = vpop.f32.mrb[22].mxu1 }
 0x215   : > { %v1442_v46 = vadd.f32 %v2342_v54, %v1227_v10  ;;  %v1418_v11 = vpop.f32.mrb[23].mxu1 }
 0x216   : > { %v1441_v55 = vadd.f32 %v1418_v11, %v1226_v52 }
 0x217   : > { %1458 = vst.msk [vmem:[#allocation3 + $0x78] sm:$0xff] %vm432_vm7, %v1442_v46 }
 0x218   : > { %1457 = vst.msk [vmem:[#allocation3 + $0x70] sm:$0xff] %vm432_vm7, %v1441_v55 }
 0x219   : > { %v1972_v6 = vld [vmem:[#allocation3 + $0x48] sm:$0xff] }
 0x21a   : > { %v1988_v45 = vmax.f32 %v1972_v6, 0.0  ;;  %v1971_v62 = vld [vmem:[#allocation3 + $0x40] sm:$0xff] }
 0x21b   : > { %v1987_v9 = vmax.f32 %v1971_v62, 0.0 }
 0x21c   : > { %2004 = vst.msk [vmem:[%s3304_s27 + $0x48] sm:$0xff] %vm432_vm7, %v1988_v45  ;;  %v2364_v63 = vpop.f32.mrb[18].mxu0 }
 0x21d   : > { %2003 = vst.msk [vmem:[%s3304_s27 + $0x40] sm:$0xff] %vm432_vm7, %v1987_v9  ;;  %v1942_v31 = vadd.f32 %v2364_v63, %v1727_v49  ;;  %v1902_v14 = vpop.f32.mrb[19].mxu0 }
 0x21e   : > { %v1941_v13 = vadd.f32 %v1902_v14, %v1726_v26  ;;  %v1731_v28 = vld [vmem:[#allocation3 + $0x78] sm:$0xff] }
 0x21f   : > { %1958 = vst.msk [vmem:[#allocation3 + $0x58] sm:$0xff] %vm432_vm7, %v1942_v31  ;;  %v1730_v35 = vld [vmem:[#allocation3 + $0x70] sm:$0xff] }
 0x220   : > { %1957 = vst.msk [vmem:[#allocation3 + $0x50] sm:$0xff] %vm432_vm7, %v1941_v13 }
 0x224   : > { %v2367_v21 = vpop.f32.mrb[20].mxu0 }
 0x225   : > { %v1944_v22 = vadd.f32 %v2367_v21, %v1729_v16  ;;  %v1912_v17 = vpop.f32.mrb[21].mxu0 }
 0x226   : > { %v1974_v15 = vld [vmem:[#allocation3 + $0x58] sm:$0xff]  ;;  %v1943_v20 = vadd.f32 %v1912_v17, %v1728_v61 }
 0x227   : > { %v1990_v37 = vmax.f32 %v1974_v15, 0.0  ;;  %v1973_v27 = vld [vmem:[#allocation3 + $0x50] sm:$0xff]  ;;  %1960 = vst.msk [vmem:[#allocation3 + $0x68] sm:$0xff] %vm432_vm7, %v1944_v22 }
 0x228   : > { %v1989_v29 = vmax.f32 %v1973_v27, 0.0  ;;  %1959 = vst.msk [vmem:[#allocation3 + $0x60] sm:$0xff] %vm432_vm7, %v1943_v20 }
 0x229   : > { %2006 = vst.msk [vmem:[%s3304_s27 + $0x58] sm:$0xff] %vm432_vm7, %v1990_v37 }
 0x22a   : > { %2005 = vst.msk [vmem:[%s3304_s27 + $0x50] sm:$0xff] %vm432_vm7, %v1989_v29 }
 0x22c   : > { %v2370_v48 = vpop.f32.mrb[22].mxu0 }
 0x22d   : > { %v1946_v18 = vadd.f32 %v2370_v48, %v1731_v28  ;;  %v1922_v42 = vpop.f32.mrb[23].mxu0 }
 0x22e   : > { %v1976_v3 = vld [vmem:[#allocation3 + $0x68] sm:$0xff]  ;;  %v1945_v23 = vadd.f32 %v1922_v42, %v1730_v35 }
 0x22f   : > { %v1992_v47 = vmax.f32 %v1976_v3, 0.0  ;;  %v1975_v32 = vld [vmem:[#allocation3 + $0x60] sm:$0xff]  ;;  %1962 = vst.msk [vmem:[#allocation3 + $0x78] sm:$0xff] %vm432_vm7, %v1946_v18 }
 0x230   : > { %v1991_v53 = vmax.f32 %v1975_v32, 0.0  ;;  %1961 = vst.msk [vmem:[#allocation3 + $0x70] sm:$0xff] %vm432_vm7, %v1945_v23 }
 0x231   : > { %2008 = vst.msk [vmem:[%s3304_s27 + $0x68] sm:$0xff] %vm432_vm7, %v1992_v47 }
 0x232   : > { %2007 = vst.msk [vmem:[%s3304_s27 + $0x60] sm:$0xff] %vm432_vm7, %v1991_v53 }
 0x236   : > { %v1978_v4 = vld [vmem:[#allocation3 + $0x78] sm:$0xff] }
 0x237   : > { %v1994_v1 = vmax.f32 %v1978_v4, 0.0  ;;  %v1977_v12 = vld [vmem:[#allocation3 + $0x70] sm:$0xff] }
 0x238   : > { %v1993_v44 = vmax.f32 %v1977_v12, 0.0 }
 0x239   : > { %2010 = vst.msk [vmem:[%s3304_s27 + $0x78] sm:$0xff] %vm432_vm7, %v1994_v1 }
 0x23a   : > { %2009 = vst.msk [vmem:[%s3304_s27 + $0x70] sm:$0xff] %vm432_vm7, %v1993_v44 }
 0x23b PF: > { %s14_s19 = sadd.s32 1, %s2483_s19   ;;  %s3382_s15 = smov %s2475_s17 }
 0x23c   : > { %p11_p10 = scmp.ge.s32.totalorder %s14_s19, 6   ;;  %s3383_s16 = smov %s2479_s18 }
 0x23d   : > { %s3384_s17 = smov %s3387_s20  ;;  %s3385_s18 = smov %s3391_s21 }
 0x23e   :  { %13 = sbr.rel (!%p11_p10) target bundleno = 3 (0x3), region = 78 }

</bundles_post_ra>
